<compile_context>
chip_gen: v7x
topology: tpu7x:2x2x1
jax: 0.10.0
libtpu: 0.0.40
codegen_flags: <defaults>
</compile_context>

<pallas_src>
import functools
import math

import jax
import jax.numpy as jnp
from jax.experimental import pallas as pl
from jax.experimental.pallas import tpu as pltpu


_VMEM_LIMIT = 48 * 1024 * 1024  # < v7x 64 MiB physical VMEM; > default scoped limits.


def _row_tile(n, target=256):
    """Largest candidate tile (<= target) that divides n; falls back to full extent."""
    for t in (target, 512, 256, 128, 64, 32, 16, 8):
        if t <= n and n % t == 0:
            return t
    return n


# ---------------------------------------------------------------- in-kernel math helpers
def _layernorm_f32(x, g, b):
    mean = jnp.mean(x, axis=-1, keepdims=True)
    xc = x - mean
    var = jnp.mean(xc * xc, axis=-1, keepdims=True)
    return (xc * jax.lax.rsqrt(var + 1e-5)) * g + b  # PyTorch LayerNorm eps=1e-5


def _erf(x):
    # Abramowitz & Stegun 7.1.26 rational approximation (|err| < 1.5e-7, ~f32 eps).
    # TODO(synk): exact lax.erf has no guaranteed Mosaic lowering; this matches
    # PyTorch's exact-erf GELU to float32 precision.
    a1, a2, a3, a4, a5 = 0.254829592, -0.284496736, 1.421413741, -1.453152027, 1.061405429
    p = 0.3275911
    sgn = jnp.where(x >= 0.0, 1.0, -1.0)
    ax = jnp.abs(x)
    t = 1.0 / (1.0 + p * ax)
    poly = ((((a5 * t + a4) * t + a3) * t + a2) * t + a1) * t
    return sgn * (1.0 - poly * jnp.exp(-ax * ax))


def _gelu_exact(x):
    return 0.5 * x * (1.0 + _erf(x * 0.7071067811865476))


# ---------------------------------------------------------------- plain linear (row-tiled)
def _linear_kernel(x_ref, w_ref, b_ref, o_ref):
    acc = jnp.dot(x_ref[...].astype(jnp.bfloat16), w_ref[...],
                  preferred_element_type=jnp.float32)
    o_ref[...] = (acc + b_ref[...]).astype(o_ref.dtype)


def linear(x, w, b, *, out_dtype=None, tile=256):
    n, din = x.shape
    dout = w.shape[1]
    tm = _row_tile(n, tile)
    return pl.pallas_call(
        _linear_kernel,
        out_shape=jax.ShapeDtypeStruct((n, dout),
                                       out_dtype if out_dtype is not None else x.dtype),
        grid=(n // tm,),
        in_specs=[pl.BlockSpec((tm, din), lambda i: (i, 0)),
                  pl.BlockSpec((din, dout), lambda i: (0, 0)),
                  pl.BlockSpec((1, dout), lambda i: (0, 0))],
        out_specs=pl.BlockSpec((tm, dout), lambda i: (i, 0)),
        compiler_params=pltpu.CompilerParams(
            dimension_semantics=("parallel",), vmem_limit_bytes=_VMEM_LIMIT),
    )(x, w, b.reshape(1, dout))


# ---------------------------------------------------------------- fused LN + linear (QKV proj)
def _ln_linear_kernel(x_ref, g_ref, b_ref, w_ref, bias_ref, o_ref):
    y = _layernorm_f32(x_ref[...].astype(jnp.float32), g_ref[...], b_ref[...])
    acc = jnp.dot(y.astype(jnp.bfloat16), w_ref[...],
                  preferred_element_type=jnp.float32)
    o_ref[...] = (acc + bias_ref[...]).astype(o_ref.dtype)


def ln_linear(x, gamma, beta, w, bias, *, out_dtype=None, tile=256):
    n, e = x.shape
    dout = w.shape[1]
    tm = _row_tile(n, tile)
    return pl.pallas_call(
        _ln_linear_kernel,
        out_shape=jax.ShapeDtypeStruct((n, dout),
                                       out_dtype if out_dtype is not None else x.dtype),
        grid=(n // tm,),
        in_specs=[pl.BlockSpec((tm, e), lambda i: (i, 0)),
                  pl.BlockSpec((1, e), lambda i: (0, 0)),
                  pl.BlockSpec((1, e), lambda i: (0, 0)),
                  pl.BlockSpec((e, dout), lambda i: (0, 0)),
                  pl.BlockSpec((1, dout), lambda i: (0, 0))],
        out_specs=pl.BlockSpec((tm, dout), lambda i: (i, 0)),
        compiler_params=pltpu.CompilerParams(
            dimension_semantics=("parallel",), vmem_limit_bytes=_VMEM_LIMIT),
    )(x, gamma.reshape(1, e), beta.reshape(1, e), w, bias.reshape(1, dout))


# ---------------------------------------------------------------- fused out-proj + residual
def _linear_res_kernel(x_ref, w_ref, b_ref, r_ref, o_ref):
    acc = jnp.dot(x_ref[...].astype(jnp.bfloat16), w_ref[...],
                  preferred_element_type=jnp.float32)
    o_ref[...] = (r_ref[...].astype(jnp.float32) + acc + b_ref[...]).astype(o_ref.dtype)


def linear_residual(x, w, b, r, *, tile=256):
    n, din = x.shape
    dout = w.shape[1]
    tm = _row_tile(n, tile)
    return pl.pallas_call(
        _linear_res_kernel,
        out_shape=jax.ShapeDtypeStruct((n, dout), r.dtype),
        grid=(n // tm,),
        in_specs=[pl.BlockSpec((tm, din), lambda i: (i, 0)),
                  pl.BlockSpec((din, dout), lambda i: (0, 0)),
                  pl.BlockSpec((1, dout), lambda i: (0, 0)),
                  pl.BlockSpec((tm, dout), lambda i: (i, 0))],
        out_specs=pl.BlockSpec((tm, dout), lambda i: (i, 0)),
        input_output_aliases={3: 0},   # write residual stream in place
        compiler_params=pltpu.CompilerParams(
            dimension_semantics=("parallel",), vmem_limit_bytes=_VMEM_LIMIT),
    )(x, w, b.reshape(1, dout), r)


# ---------------------------------------------------------------- fused LN + MLP + residual
def _ln_mlp_res_kernel(x_ref, g_ref, b_ref, w1_ref, b1_ref, w2_ref, b2_ref, o_ref):
    x = x_ref[...].astype(jnp.float32)
    y = _layernorm_f32(x, g_ref[...], b_ref[...])
    h = jnp.dot(y.astype(jnp.bfloat16), w1_ref[...],
                preferred_element_type=jnp.float32) + b1_ref[...]
    h = _gelu_exact(h)                                   # f32 elementwise (v5e-safe)
    z = jnp.dot(h.astype(jnp.bfloat16), w2_ref[...],
                preferred_element_type=jnp.float32) + b2_ref[...]
    o_ref[...] = (x + z).astype(o_ref.dtype)


def ln_mlp_residual(x, gamma, beta, w1, b1, w2, b2, *, tile=256):
    n, e = x.shape
    d = w1.shape[1]
    tm = _row_tile(n, tile)
    return pl.pallas_call(
        _ln_mlp_res_kernel,
        out_shape=jax.ShapeDtypeStruct((n, e), x.dtype),
        grid=(n // tm,),
        in_specs=[pl.BlockSpec((tm, e), lambda i: (i, 0)),
                  pl.BlockSpec((1, e), lambda i: (0, 0)),
                  pl.BlockSpec((1, e), lambda i: (0, 0)),
                  pl.BlockSpec((e, d), lambda i: (0, 0)),
                  pl.BlockSpec((1, d), lambda i: (0, 0)),
                  pl.BlockSpec((d, e), lambda i: (0, 0)),
                  pl.BlockSpec((1, e), lambda i: (0, 0))],
        out_specs=pl.BlockSpec((tm, e), lambda i: (i, 0)),
        input_output_aliases={0: 0},   # residual stream updated in place
        compiler_params=pltpu.CompilerParams(
            dimension_semantics=("parallel",), vmem_limit_bytes=_VMEM_LIMIT),
    )(x, gamma.reshape(1, e), beta.reshape(1, e), w1, b1.reshape(1, d), w2, b2.reshape(1, e))


# ---------------------------------------------------------------- flash attention (KV-tiled)
def _flash_attn_kernel(q_ref, k_ref, v_ref, o_ref, m_sc, l_sc, acc_sc, *, scale):
    kv = pl.program_id(2)

    @pl.when(kv == 0)
    def _():
        m_sc[...] = jnp.full_like(m_sc, -jnp.inf)
        l_sc[...] = jnp.zeros_like(l_sc)
        acc_sc[...] = jnp.zeros_like(acc_sc)

    q = q_ref[...][0]                                           # (TQ, Dh)  bf16
    k = k_ref[...][0]                                           # (TKV, Dh) bf16
    v = v_ref[...][0]                                           # (TKV, Dh) bf16
    s = jax.lax.dot_general(q, k, (((1,), (1,)), ((), ())),
                            preferred_element_type=jnp.float32) * scale   # (TQ, TKV) f32

    m_prev = m_sc[...]
    m_new = jnp.maximum(m_prev, jnp.max(s, axis=-1, keepdims=True))
    alpha = jnp.exp(m_prev - m_new)
    p = jnp.exp(s - m_new)
    l_sc[...] = alpha * l_sc[...] + jnp.sum(p, axis=-1, keepdims=True)
    acc_sc[...] = alpha * acc_sc[...] + jnp.dot(p.astype(jnp.bfloat16), v,
                                                preferred_element_type=jnp.float32)
    m_sc[...] = m_new

    @pl.when(kv == pl.num_programs(2) - 1)
    def _():
        inv = pl.reciprocal(l_sc[...], approx=True)             # EUP slot, VALU-free
        o_ref[...] = (acc_sc[...] * inv)[None].astype(o_ref.dtype)


def flash_attention(q, k, v, *, scale, tile_q=128, tile_kv=128):
    """q/k/v: (batch*heads, S, head_dim). Online softmax over KV tiles."""
    bh, s, dh = q.shape
    tq = _row_tile(s, tile_q)
    tkv = _row_tile(s, tile_kv)
    q_spec = pl.BlockSpec((1, tq, dh), lambda b, qi, ki: (b, qi, 0))
    kv_spec = pl.BlockSpec((1, tkv, dh), lambda b, qi, ki: (b, ki, 0))
    # TODO(synk): pack several heads per block so the lane (last) dim reaches 128 when
    # head_dim < 128; currently each block's last dim is the full head_dim.
    return pl.pallas_call(
        functools.partial(_flash_attn_kernel, scale=scale),
        out_shape=jax.ShapeDtypeStruct((bh, s, dh), q.dtype),
        grid=(bh, s // tq, s // tkv),
        in_specs=[q_spec, kv_spec, kv_spec],
        out_specs=q_spec,
        scratch_shapes=[pltpu.VMEM((tq, 1), jnp.float32),
                        pltpu.VMEM((tq, 1), jnp.float32),
                        pltpu.VMEM((tq, dh), jnp.float32)],
        compiler_params=pltpu.CompilerParams(
            dimension_semantics=("parallel", "parallel", "arbitrary"),
            vmem_limit_bytes=_VMEM_LIMIT),
    )(q, k, v)


# ---------------------------------------------------------------- parameters
def init_params(key, *, in_channels, patch_size, img_size, embed_dim,
                num_heads, num_layers, mlp_dim):
    patch_dim = in_channels * patch_size * patch_size
    num_patches = (img_size // patch_size) ** 2
    keys = jax.random.split(key, 3 + num_layers)

    def dense(k, din, dout):
        kw, kb = jax.random.split(k)
        # Weight matrices stored bf16 (MXU operands); biases/LN params stay f32.
        w = (jax.random.normal(kw, (din, dout), jnp.float32) * 0.02).astype(jnp.bfloat16)
        b = jax.random.normal(kb, (dout,), jnp.float32) * 0.02
        return w, b

    pe_w, pe_b = dense(keys[0], patch_dim, embed_dim)
    pos = jax.random.normal(keys[1], (1, num_patches, embed_dim), jnp.float32) * 0.02
    dec_w, dec_b = dense(keys[2], embed_dim, patch_dim)

    layers = []
    for l in range(num_layers):
        ks = jax.random.split(keys[3 + l], 4)
        qkv_w, qkv_b = dense(ks[0], embed_dim, 3 * embed_dim)   # [Wq|Wk|Wv] stacked
        out_w, out_b = dense(ks[1], embed_dim, embed_dim)
        w1, b1 = dense(ks[2], embed_dim, mlp_dim)
        w2, b2 = dense(ks[3], mlp_dim, embed_dim)
        layers.append(dict(
            ln1_g=jnp.ones((embed_dim,), jnp.float32), ln1_b=jnp.zeros((embed_dim,), jnp.float32),
            qkv_w=qkv_w, qkv_b=qkv_b, out_w=out_w, out_b=out_b,
            ln2_g=jnp.ones((embed_dim,), jnp.float32), ln2_b=jnp.zeros((embed_dim,), jnp.float32),
            mlp_w1=w1, mlp_b1=b1, mlp_w2=w2, mlp_b2=b2,
        ))
    return dict(patch_embed_w=pe_w, patch_embed_b=pe_b, pos=pos,
                dec_w=dec_w, dec_b=dec_b, layers=layers)


# ---------------------------------------------------------------- forward
def pxt_forward(x, params, *, patch_size, img_size, num_heads):
    B, C, H, W = x.shape
    P = patch_size
    G = img_size // P
    S = G * G
    E = params["patch_embed_w"].shape[1]
    Dh = E // num_heads
    scale = 1.0 / math.sqrt(Dh)

    # patchify: == x.unfold(2,P,P).unfold(3,P,P).permute(0,2,3,1,4,5).view(B,-1,C*P*P)
    xp = x.reshape(B, C, G, P, G, P).transpose(0, 2, 4, 1, 3, 5).reshape(B * S, C * P * P)

    tok = linear(xp, params["patch_embed_w"], params["patch_embed_b"])        # [B*S, E] f32
    tok = (tok.reshape(B, S, E) + params["pos"]).reshape(B * S, E)

    for lp in params["layers"]:
        # --- MHSA block: x = x + out_proj(attn(LN1(x))) ---
        qkv = ln_linear(tok, lp["ln1_g"], lp["ln1_b"], lp["qkv_w"], lp["qkv_b"],
                        out_dtype=jnp.bfloat16)                               # [B*S, 3E]
        # TODO(synk): fuse the head split/merge transposes into the attention kernel via
        # index_maps; kept as XLA layout glue (bf16) for now.
        qkv = qkv.reshape(B, S, 3, num_heads, Dh)
        q = qkv[:, :, 0].transpose(0, 2, 1, 3).reshape(B * num_heads, S, Dh)
        k = qkv[:, :, 1].transpose(0, 2, 1, 3).reshape(B * num_heads, S, Dh)
        v = qkv[:, :, 2].transpose(0, 2, 1, 3).reshape(B * num_heads, S, Dh)
        a = flash_attention(q, k, v, scale=scale)                             # [B*H, S, Dh] bf16
        a = a.reshape(B, num_heads, S, Dh).transpose(0, 2, 1, 3).reshape(B * S, E)
        tok = linear_residual(a, lp["out_w"], lp["out_b"], tok)               # f32 residual
        # --- MLP block: x = x + W2(gelu(W1(LN2(x)))) ---
        tok = ln_mlp_residual(tok, lp["ln2_g"], lp["ln2_b"],
                              lp["mlp_w1"], lp["mlp_b1"], lp["mlp_w2"], lp["mlp_b2"])

    dec = linear(tok, params["dec_w"], params["dec_b"])                       # [B*S, C*P*P]
    # unpatchify: == view(B,G,G,3,P,P).permute(0,3,1,4,2,5).view(B,3,H,W)
    img = dec.reshape(B, G, G, C, P, P).transpose(0, 3, 1, 4, 2, 5).reshape(B, C, img_size, img_size)
    return img


# ---------------------------------------------------------------- main
if __name__ == "__main__":
    # Small config consistent with the module structure.
    IMG, PATCH, C = 16, 4, 3          # num_patches = 16, patch_dim = 48
    EMB, HEADS, LAYERS, MLP = 32, 4, 2, 64
    BATCH = 2

    key = jax.random.PRNGKey(0)
    kx, kp = jax.random.split(key)
    x = jax.random.normal(kx, (BATCH, C, IMG, IMG), jnp.float32)
    params = init_params(kp, in_channels=C, patch_size=PATCH, img_size=IMG,
                         embed_dim=EMB, num_heads=HEADS, num_layers=LAYERS, mlp_dim=MLP)

    fwd = jax.jit(functools.partial(pxt_forward, patch_size=PATCH, img_size=IMG,
                                    num_heads=HEADS))
    out = fwd(x, params)
    jax.block_until_ready(out)
    assert out.shape == (BATCH, C, IMG, IMG) and out.dtype == jnp.float32
    print("KERNEL_OK")
</pallas_src>

<mosaic_0001>
module attributes {stable_mosaic.version = 11 : i64} {
  func.func @_linear_kernel(%arg0: i32, %arg1: memref<32x48xf32, #tpu.memory_space<vmem>>, %arg2: memref<48x32xbf16, #tpu.memory_space<vmem>>, %arg3: memref<1x32xf32, #tpu.memory_space<vmem>>, %arg4: memref<32x32xf32, #tpu.memory_space<vmem>>) attributes {dimension_semantics = [#tpu.dimension_semantics<parallel>], iteration_bounds = array<i64: 1>, scalar_prefetch = 0 : i64, scratch_operands = 0 : i64, tpu.core_type = #tpu.core_type<tc>, window_params = [{transform_indices = @transform_0, window_bounds = array<i64: 32, 48>}, {pipeline_mode = #tpu.pipeline_mode<synchronous>, transform_indices = @transform_1, window_bounds = array<i64: 48, 32>}, {pipeline_mode = #tpu.pipeline_mode<synchronous>, transform_indices = @transform_2, window_bounds = array<i64: 1, 32>}, {transform_indices = @transform_3, window_bounds = array<i64: 32, 32>}]} {
    %c0 = arith.constant 0 : index
    %c0_0 = arith.constant 0 : index
    %0 = vector.load %arg1[%c0, %c0_0] : memref<32x48xf32, #tpu.memory_space<vmem>>, vector<32x48xf32>
    %1 = arith.truncf %0 : vector<32x48xf32> to vector<32x48xbf16>
    %c0_1 = arith.constant 0 : index
    %c0_2 = arith.constant 0 : index
    %2 = vector.load %arg2[%c0_1, %c0_2] : memref<48x32xbf16, #tpu.memory_space<vmem>>, vector<48x32xbf16>
    %cst = arith.constant dense<0.000000e+00> : vector<32x32xf32>
    %3 = tpu.matmul %1, %2, %cst {dimension_numbers = #tpu.dot_dimension_numbers<[1], [0], [0], [1], [0, 0, 1, 1], [], []>} : vector<32x48xbf16>, vector<48x32xbf16>, vector<32x32xf32> -> vector<32x32xf32>
    %c0_3 = arith.constant 0 : index
    %c0_4 = arith.constant 0 : index
    %4 = vector.load %arg3[%c0_3, %c0_4] : memref<1x32xf32, #tpu.memory_space<vmem>>, vector<1x32xf32>
    %5 = vector.broadcast %4 : vector<1x32xf32> to vector<32x32xf32>
    %6 = arith.addf %3, %5 : vector<32x32xf32>
    %c0_5 = arith.constant 0 : index
    %c0_6 = arith.constant 0 : index
    %7 = vector.load %arg4[%c0_5, %c0_6] : memref<32x32xf32, #tpu.memory_space<vmem>>, vector<32x32xf32>
    tpu.vector_store %arg4[%c0_5, %c0_6], %6 {strides = array<i32>} : memref<32x32xf32, #tpu.memory_space<vmem>>, vector<32x32xf32>,
    return
  }
  func.func @transform_0(%arg0: i32) -> (i32, i32) {
    %c0_i32 = arith.constant 0 : i32
    %c0_i32_0 = arith.constant 0 : i32
    return %arg0, %c0_i32 : i32, i32
  }
  func.func @transform_1(%arg0: i32) -> (i32, i32) {
    %c0_i32 = arith.constant 0 : i32
    %c0_i32_0 = arith.constant 0 : i32
    %c0_i32_1 = arith.constant 0 : i32
    return %c0_i32, %c0_i32_0 : i32, i32
  }
  func.func @transform_2(%arg0: i32) -> (i32, i32) {
    %c0_i32 = arith.constant 0 : i32
    %c0_i32_0 = arith.constant 0 : i32
    %c0_i32_1 = arith.constant 0 : i32
    return %c0_i32, %c0_i32_0 : i32, i32
  }
  func.func @transform_3(%arg0: i32) -> (i32, i32) {
    %c0_i32 = arith.constant 0 : i32
    %c0_i32_0 = arith.constant 0 : i32
    return %arg0, %c0_i32 : i32, i32
  }
}

module attributes {stable_mosaic.version = 11 : i64} {
  func.func @_ln_linear_kernel(%arg0: i32, %arg1: memref<32x32xf32, #tpu.memory_space<vmem>>, %arg2: memref<1x32xf32, #tpu.memory_space<vmem>>, %arg3: memref<1x32xf32, #tpu.memory_space<vmem>>, %arg4: memref<32x96xbf16, #tpu.memory_space<vmem>>, %arg5: memref<1x96xf32, #tpu.memory_space<vmem>>, %arg6: memref<32x96xbf16, #tpu.memory_space<vmem>>) attributes {dimension_semantics = [#tpu.dimension_semantics<parallel>], iteration_bounds = array<i64: 1>, scalar_prefetch = 0 : i64, scratch_operands = 0 : i64, tpu.core_type = #tpu.core_type<tc>, window_params = [{transform_indices = @transform_0, window_bounds = array<i64: 32, 32>}, {pipeline_mode = #tpu.pipeline_mode<synchronous>, transform_indices = @transform_1, window_bounds = array<i64: 1, 32>}, {pipeline_mode = #tpu.pipeline_mode<synchronous>, transform_indices = @transform_2, window_bounds = array<i64: 1, 32>}, {pipeline_mode = #tpu.pipeline_mode<synchronous>, transform_indices = @transform_3, window_bounds = array<i64: 32, 96>}, {pipeline_mode = #tpu.pipeline_mode<synchronous>, transform_indices = @transform_4, window_bounds = array<i64: 1, 96>}, {transform_indices = @transform_5, window_bounds = array<i64: 32, 96>}]} {
    %c0 = arith.constant 0 : index
    %c0_0 = arith.constant 0 : index
    %0 = vector.load %arg1[%c0, %c0_0] : memref<32x32xf32, #tpu.memory_space<vmem>>, vector<32x32xf32>
    %c0_1 = arith.constant 0 : index
    %c0_2 = arith.constant 0 : index
    %1 = vector.load %arg2[%c0_1, %c0_2] : memref<1x32xf32, #tpu.memory_space<vmem>>, vector<1x32xf32>
    %c0_3 = arith.constant 0 : index
    %c0_4 = arith.constant 0 : index
    %2 = vector.load %arg3[%c0_3, %c0_4] : memref<1x32xf32, #tpu.memory_space<vmem>>, vector<1x32xf32>
    %cst = arith.constant dense<0.000000e+00> : vector<32xf32>
    %3 = vector.multi_reduction <add>, %0, %cst [1] : vector<32x32xf32> to vector<32xf32>
    %4 = vector.shape_cast %3 : vector<32xf32> to vector<32x1xf32>
    %cst_5 = arith.constant 3.200000e+01 : f32
    %5 = vector.broadcast %cst_5 : f32 to vector<32x1xf32>
    %6 = arith.divf %4, %5 : vector<32x1xf32>
    %7 = vector.broadcast %6 : vector<32x1xf32> to vector<32x32xf32>
    %8 = arith.subf %0, %7 : vector<32x32xf32>
    %9 = arith.mulf %8, %8 : vector<32x32xf32>
    %cst_6 = arith.constant dense<0.000000e+00> : vector<32xf32>
    %10 = vector.multi_reduction <add>, %9, %cst_6 [1] : vector<32x32xf32> to vector<32xf32>
    %11 = vector.shape_cast %10 : vector<32xf32> to vector<32x1xf32>
    %cst_7 = arith.constant 3.200000e+01 : f32
    %12 = vector.broadcast %cst_7 : f32 to vector<32x1xf32>
    %13 = arith.divf %11, %12 : vector<32x1xf32>
    %cst_8 = arith.constant 9.99999974E-6 : f32
    %14 = vector.broadcast %cst_8 : f32 to vector<32x1xf32>
    %15 = arith.addf %13, %14 : vector<32x1xf32>
    %16 = math.rsqrt %15 : vector<32x1xf32>
    %17 = vector.broadcast %16 : vector<32x1xf32> to vector<32x32xf32>
    %18 = arith.mulf %8, %17 : vector<32x32xf32>
    %19 = vector.broadcast %1 : vector<1x32xf32> to vector<32x32xf32>
    %20 = arith.mulf %18, %19 : vector<32x32xf32>
    %21 = vector.broadcast %2 : vector<1x32xf32> to vector<32x32xf32>
    %22 = arith.addf %20, %21 : vector<32x32xf32>
    %23 = arith.truncf %22 : vector<32x32xf32> to vector<32x32xbf16>
    %c0_9 = arith.constant 0 : index
    %c0_10 = arith.constant 0 : index
    %24 = vector.load %arg4[%c0_9, %c0_10] : memref<32x96xbf16, #tpu.memory_space<vmem>>, vector<32x96xbf16>
    %cst_11 = arith.constant dense<0.000000e+00> : vector<32x96xf32>
    %25 = tpu.matmul %23, %24, %cst_11 {dimension_numbers = #tpu.dot_dimension_numbers<[1], [0], [0], [1], [0, 0, 1, 1], [], []>} : vector<32x32xbf16>, vector<32x96xbf16>, vector<32x96xf32> -> vector<32x96xf32>
    %c0_12 = arith.constant 0 : index
    %c0_13 = arith.constant 0 : index
    %26 = vector.load %arg5[%c0_12, %c0_13] : memref<1x96xf32, #tpu.memory_space<vmem>>, vector<1x96xf32>
    %27 = vector.broadcast %26 : vector<1x96xf32> to vector<32x96xf32>
    %28 = arith.addf %25, %27 : vector<32x96xf32>
    %29 = arith.truncf %28 : vector<32x96xf32> to vector<32x96xbf16>
    %c0_14 = arith.constant 0 : index
    %c0_15 = arith.constant 0 : index
    %30 = vector.load %arg6[%c0_14, %c0_15] : memref<32x96xbf16, #tpu.memory_space<vmem>>, vector<32x96xbf16>
    tpu.vector_store %arg6[%c0_14, %c0_15], %29 {strides = array<i32>} : memref<32x96xbf16, #tpu.memory_space<vmem>>, vector<32x96xbf16>,
    return
  }
  func.func @transform_0(%arg0: i32) -> (i32, i32) {
    %c0_i32 = arith.constant 0 : i32
    %c0_i32_0 = arith.constant 0 : i32
    return %arg0, %c0_i32 : i32, i32
  }
  func.func @transform_1(%arg0: i32) -> (i32, i32) {
    %c0_i32 = arith.constant 0 : i32
    %c0_i32_0 = arith.constant 0 : i32
    %c0_i32_1 = arith.constant 0 : i32
    return %c0_i32, %c0_i32_0 : i32, i32
  }
  func.func @transform_2(%arg0: i32) -> (i32, i32) {
    %c0_i32 = arith.constant 0 : i32
    %c0_i32_0 = arith.constant 0 : i32
    %c0_i32_1 = arith.constant 0 : i32
    return %c0_i32, %c0_i32_0 : i32, i32
  }
  func.func @transform_3(%arg0: i32) -> (i32, i32) {
    %c0_i32 = arith.constant 0 : i32
    %c0_i32_0 = arith.constant 0 : i32
    %c0_i32_1 = arith.constant 0 : i32
    return %c0_i32, %c0_i32_0 : i32, i32
  }
  func.func @transform_4(%arg0: i32) -> (i32, i32) {
    %c0_i32 = arith.constant 0 : i32
    %c0_i32_0 = arith.constant 0 : i32
    %c0_i32_1 = arith.constant 0 : i32
    return %c0_i32, %c0_i32_0 : i32, i32
  }
  func.func @transform_5(%arg0: i32) -> (i32, i32) {
    %c0_i32 = arith.constant 0 : i32
    %c0_i32_0 = arith.constant 0 : i32
    return %arg0, %c0_i32 : i32, i32
  }
}

module attributes {stable_mosaic.version = 11 : i64} {
  func.func @_flash_attn_kernel(%arg0: i32, %arg1: i32, %arg2: i32, %arg3: memref<1x16x8xbf16, #tpu.memory_space<vmem>>, %arg4: memref<1x16x8xbf16, #tpu.memory_space<vmem>>, %arg5: memref<1x16x8xbf16, #tpu.memory_space<vmem>>, %arg6: memref<1x16x8xbf16, #tpu.memory_space<vmem>>, %arg7: memref<16x1xf32, #tpu.memory_space<vmem>>, %arg8: memref<16x1xf32, #tpu.memory_space<vmem>>, %arg9: memref<16x8xf32, #tpu.memory_space<vmem>>) attributes {dimension_semantics = [#tpu.dimension_semantics<parallel>, #tpu.dimension_semantics<parallel>, #tpu.dimension_semantics<arbitrary>], iteration_bounds = array<i64: 8, 1, 1>, scalar_prefetch = 0 : i64, scratch_operands = 3 : i64, tpu.core_type = #tpu.core_type<tc>, window_params = [{transform_indices = @transform_0, window_bounds = array<i64: 1, 16, 8>}, {transform_indices = @transform_1, window_bounds = array<i64: 1, 16, 8>}, {transform_indices = @transform_2, window_bounds = array<i64: 1, 16, 8>}, {transform_indices = @transform_3, window_bounds = array<i64: 1, 16, 8>}]} {
    %c0_i32 = arith.constant 0 : i32
    %0 = arith.cmpi eq, %arg2, %c0_i32 : i32
    %1 = arith.extui %0 : i1 to i32
    %c0_i32_0 = arith.constant 0 : i32
    %2 = arith.cmpi ne, %1, %c0_i32_0 : i32
    scf.if %2 {
      %cst_27 = arith.constant 0xFF800000 : f32
      %38 = vector.broadcast %cst_27 : f32 to vector<16x1xf32>
      %c0_28 = arith.constant 0 : index
      %c0_29 = arith.constant 0 : index
      %39 = vector.load %arg7[%c0_28, %c0_29] : memref<16x1xf32, #tpu.memory_space<vmem>>, vector<16x1xf32>
      tpu.vector_store %arg7[%c0_28, %c0_29], %38 {strides = array<i32>} : memref<16x1xf32, #tpu.memory_space<vmem>>, vector<16x1xf32>,
      %cst_30 = arith.constant 0.000000e+00 : f32
      %40 = vector.broadcast %cst_30 : f32 to vector<16x1xf32>
      %c0_31 = arith.constant 0 : index
      %c0_32 = arith.constant 0 : index
      %41 = vector.load %arg8[%c0_31, %c0_32] : memref<16x1xf32, #tpu.memory_space<vmem>>, vector<16x1xf32>
      tpu.vector_store %arg8[%c0_31, %c0_32], %40 {strides = array<i32>} : memref<16x1xf32, #tpu.memory_space<vmem>>, vector<16x1xf32>,
      %cst_33 = arith.constant 0.000000e+00 : f32
      %42 = vector.broadcast %cst_33 : f32 to vector<16x8xf32>
      %c0_34 = arith.constant 0 : index
      %c0_35 = arith.constant 0 : index
      %43 = vector.load %arg9[%c0_34, %c0_35] : memref<16x8xf32, #tpu.memory_space<vmem>>, vector<16x8xf32>
      tpu.vector_store %arg9[%c0_34, %c0_35], %42 {strides = array<i32>} : memref<16x8xf32, #tpu.memory_space<vmem>>, vector<16x8xf32>,
    } else {
    }
    %c0 = arith.constant 0 : index
    %c0_1 = arith.constant 0 : index
    %c0_2 = arith.constant 0 : index
    %3 = vector.load %arg3[%c0, %c0_1, %c0_2] : memref<1x16x8xbf16, #tpu.memory_space<vmem>>, vector<1x16x8xbf16>
    %4 = vector.shape_cast %3 : vector<1x16x8xbf16> to vector<16x8xbf16>
    %c0_3 = arith.constant 0 : index
    %c0_4 = arith.constant 0 : index
    %c0_5 = arith.constant 0 : index
    %5 = vector.load %arg4[%c0_3, %c0_4, %c0_5] : memref<1x16x8xbf16, #tpu.memory_space<vmem>>, vector<1x16x8xbf16>
    %6 = vector.shape_cast %5 : vector<1x16x8xbf16> to vector<16x8xbf16>
    %c0_6 = arith.constant 0 : index
    %c0_7 = arith.constant 0 : index
    %c0_8 = arith.constant 0 : index
    %7 = vector.load %arg5[%c0_6, %c0_7, %c0_8] : memref<1x16x8xbf16, #tpu.memory_space<vmem>>, vector<1x16x8xbf16>
    %8 = vector.shape_cast %7 : vector<1x16x8xbf16> to vector<16x8xbf16>
    %cst = arith.constant dense<0.000000e+00> : vector<16x16xf32>
    %9 = tpu.matmul %4, %6, %cst {dimension_numbers = #tpu.dot_dimension_numbers<[1], [1], [0], [0], [0, 0, 1, 0], [], []>} : vector<16x8xbf16>, vector<16x8xbf16>, vector<16x16xf32> -> vector<16x16xf32>
    %cst_9 = arith.constant 0.353553385 : f32
    %10 = vector.broadcast %cst_9 : f32 to vector<16x16xf32>
    %11 = arith.mulf %9, %10 : vector<16x16xf32>
    %c0_10 = arith.constant 0 : index
    %c0_11 = arith.constant 0 : index
    %12 = vector.load %arg7[%c0_10, %c0_11] : memref<16x1xf32, #tpu.memory_space<vmem>>, vector<16x1xf32>
    %cst_12 = arith.constant dense<0xFF800000> : vector<16xf32>
    %13 = vector.multi_reduction <maximumf>, %11, %cst_12 [1] : vector<16x16xf32> to vector<16xf32>
    %14 = vector.shape_cast %13 : vector<16xf32> to vector<16x1xf32>
    %15 = arith.maximumf %12, %14 : vector<16x1xf32>
    %16 = arith.subf %12, %15 : vector<16x1xf32>
    %17 = math.exp %16 : vector<16x1xf32>
    %18 = vector.broadcast %15 : vector<16x1xf32> to vector<16x16xf32>
    %19 = arith.subf %11, %18 : vector<16x16xf32>
    %20 = math.exp %19 : vector<16x16xf32>
    %c0_13 = arith.constant 0 : index
    %c0_14 = arith.constant 0 : index
    %21 = vector.load %arg8[%c0_13, %c0_14] : memref<16x1xf32, #tpu.memory_space<vmem>>, vector<16x1xf32>
    %22 = arith.mulf %17, %21 : vector<16x1xf32>
    %cst_15 = arith.constant dense<0.000000e+00> : vector<16xf32>
    %23 = vector.multi_reduction <add>, %20, %cst_15 [1] : vector<16x16xf32> to vector<16xf32>
    %24 = vector.shape_cast %23 : vector<16xf32> to vector<16x1xf32>
    %25 = arith.addf %22, %24 : vector<16x1xf32>
    %c0_16 = arith.constant 0 : index
    %c0_17 = arith.constant 0 : index
    %26 = vector.load %arg8[%c0_16, %c0_17] : memref<16x1xf32, #tpu.memory_space<vmem>>, vector<16x1xf32>
    tpu.vector_store %arg8[%c0_16, %c0_17], %25 {strides = array<i32>} : memref<16x1xf32, #tpu.memory_space<vmem>>, vector<16x1xf32>,
    %c0_18 = arith.constant 0 : index
    %c0_19 = arith.constant 0 : index
    %27 = vector.load %arg9[%c0_18, %c0_19] : memref<16x8xf32, #tpu.memory_space<vmem>>, vector<16x8xf32>
    %28 = vector.broadcast %17 : vector<16x1xf32> to vector<16x8xf32>
    %29 = arith.mulf %28, %27 : vector<16x8xf32>
    %30 = arith.truncf %20 : vector<16x16xf32> to vector<16x16xbf16>
    %cst_20 = arith.constant dense<0.000000e+00> : vector<16x8xf32>
    %31 = tpu.matmul %30, %8, %cst_20 {dimension_numbers = #tpu.dot_dimension_numbers<[1], [0], [0], [1], [0, 0, 1, 1], [], []>} : vector<16x16xbf16>, vector<16x8xbf16>, vector<16x8xf32> -> vector<16x8xf32>
    %32 = arith.addf %29, %31 : vector<16x8xf32>
    %c0_21 = arith.constant 0 : index
    %c0_22 = arith.constant 0 : index
    %33 = vector.load %arg9[%c0_21, %c0_22] : memref<16x8xf32, #tpu.memory_space<vmem>>, vector<16x8xf32>
    tpu.vector_store %arg9[%c0_21, %c0_22], %32 {strides = array<i32>} : memref<16x8xf32, #tpu.memory_space<vmem>>, vector<16x8xf32>,
    %c0_23 = arith.constant 0 : index
    %c0_24 = arith.constant 0 : index
    %34 = vector.load %arg7[%c0_23, %c0_24] : memref<16x1xf32, #tpu.memory_space<vmem>>, vector<16x1xf32>
    tpu.vector_store %arg7[%c0_23, %c0_24], %15 {strides = array<i32>} : memref<16x1xf32, #tpu.memory_space<vmem>>, vector<16x1xf32>,
    %c0_i32_25 = arith.constant 0 : i32
    %35 = arith.cmpi eq, %arg2, %c0_i32_25 : i32
    %36 = arith.extui %35 : i1 to i32
    %c0_i32_26 = arith.constant 0 : i32
    %37 = arith.cmpi ne, %36, %c0_i32_26 : i32
    scf.if %37 {
      %c0_27 = arith.constant 0 : index
      %c0_28 = arith.constant 0 : index
      %38 = vector.load %arg8[%c0_27, %c0_28] : memref<16x1xf32, #tpu.memory_space<vmem>>, vector<16x1xf32>
      %39 = tpu.reciprocal %38 {approx = true} : vector<16x1xf32> -> vector<16x1xf32>
      %c0_29 = arith.constant 0 : index
      %c0_30 = arith.constant 0 : index
      %40 = vector.load %arg9[%c0_29, %c0_30] : memref<16x8xf32, #tpu.memory_space<vmem>>, vector<16x8xf32>
      %41 = vector.broadcast %39 : vector<16x1xf32> to vector<16x8xf32>
      %42 = arith.mulf %40, %41 : vector<16x8xf32>
      %43 = vector.shape_cast %42 : vector<16x8xf32> to vector<1x16x8xf32>
      %44 = arith.truncf %43 : vector<1x16x8xf32> to vector<1x16x8xbf16>
      %c0_31 = arith.constant 0 : index
      %c0_32 = arith.constant 0 : index
      %c0_33 = arith.constant 0 : index
      %45 = vector.load %arg6[%c0_31, %c0_32, %c0_33] : memref<1x16x8xbf16, #tpu.memory_space<vmem>>, vector<1x16x8xbf16>
      tpu.vector_store %arg6[%c0_31, %c0_32, %c0_33], %44 {strides = array<i32>} : memref<1x16x8xbf16, #tpu.memory_space<vmem>>, vector<1x16x8xbf16>,
    } else {
    }
    return
  }
  func.func @transform_0(%arg0: i32, %arg1: i32, %arg2: i32) -> (i32, i32, i32) {
    %c0_i32 = arith.constant 0 : i32
    %c0_i32_0 = arith.constant 0 : i32
    return %arg0, %arg1, %c0_i32 : i32, i32, i32
  }
  func.func @transform_1(%arg0: i32, %arg1: i32, %arg2: i32) -> (i32, i32, i32) {
    %c0_i32 = arith.constant 0 : i32
    %c0_i32_0 = arith.constant 0 : i32
    return %arg0, %arg2, %c0_i32 : i32, i32, i32
  }
  func.func @transform_2(%arg0: i32, %arg1: i32, %arg2: i32) -> (i32, i32, i32) {
    %c0_i32 = arith.constant 0 : i32
    %c0_i32_0 = arith.constant 0 : i32
    return %arg0, %arg2, %c0_i32 : i32, i32, i32
  }
  func.func @transform_3(%arg0: i32, %arg1: i32, %arg2: i32) -> (i32, i32, i32) {
    %c0_i32 = arith.constant 0 : i32
    %c0_i32_0 = arith.constant 0 : i32
    return %arg0, %arg1, %c0_i32 : i32, i32, i32
  }
}

module attributes {stable_mosaic.version = 11 : i64} {
  func.func @_linear_res_kernel(%arg0: i32, %arg1: memref<32x32xbf16, #tpu.memory_space<vmem>>, %arg2: memref<32x32xbf16, #tpu.memory_space<vmem>>, %arg3: memref<1x32xf32, #tpu.memory_space<vmem>>, %arg4: memref<32x32xf32, #tpu.memory_space<vmem>>, %arg5: memref<32x32xf32, #tpu.memory_space<vmem>>) attributes {dimension_semantics = [#tpu.dimension_semantics<parallel>], iteration_bounds = array<i64: 1>, scalar_prefetch = 0 : i64, scratch_operands = 0 : i64, tpu.core_type = #tpu.core_type<tc>, window_params = [{transform_indices = @transform_0, window_bounds = array<i64: 32, 32>}, {pipeline_mode = #tpu.pipeline_mode<synchronous>, transform_indices = @transform_1, window_bounds = array<i64: 32, 32>}, {pipeline_mode = #tpu.pipeline_mode<synchronous>, transform_indices = @transform_2, window_bounds = array<i64: 1, 32>}, {transform_indices = @transform_3, window_bounds = array<i64: 32, 32>}, {transform_indices = @transform_4, window_bounds = array<i64: 32, 32>}]} {
    %c0 = arith.constant 0 : index
    %c0_0 = arith.constant 0 : index
    %0 = vector.load %arg1[%c0, %c0_0] : memref<32x32xbf16, #tpu.memory_space<vmem>>, vector<32x32xbf16>
    %c0_1 = arith.constant 0 : index
    %c0_2 = arith.constant 0 : index
    %1 = vector.load %arg2[%c0_1, %c0_2] : memref<32x32xbf16, #tpu.memory_space<vmem>>, vector<32x32xbf16>
    %cst = arith.constant dense<0.000000e+00> : vector<32x32xf32>
    %2 = tpu.matmul %0, %1, %cst {dimension_numbers = #tpu.dot_dimension_numbers<[1], [0], [0], [1], [0, 0, 1, 1], [], []>} : vector<32x32xbf16>, vector<32x32xbf16>, vector<32x32xf32> -> vector<32x32xf32>
    %c0_3 = arith.constant 0 : index
    %c0_4 = arith.constant 0 : index
    %3 = vector.load %arg4[%c0_3, %c0_4] : memref<32x32xf32, #tpu.memory_space<vmem>>, vector<32x32xf32>
    %4 = arith.addf %3, %2 : vector<32x32xf32>
    %c0_5 = arith.constant 0 : index
    %c0_6 = arith.constant 0 : index
    %5 = vector.load %arg3[%c0_5, %c0_6] : memref<1x32xf32, #tpu.memory_space<vmem>>, vector<1x32xf32>
    %6 = vector.broadcast %5 : vector<1x32xf32> to vector<32x32xf32>
    %7 = arith.addf %4, %6 : vector<32x32xf32>
    %c0_7 = arith.constant 0 : index
    %c0_8 = arith.constant 0 : index
    %8 = vector.load %arg5[%c0_7, %c0_8] : memref<32x32xf32, #tpu.memory_space<vmem>>, vector<32x32xf32>
    tpu.vector_store %arg5[%c0_7, %c0_8], %7 {strides = array<i32>} : memref<32x32xf32, #tpu.memory_space<vmem>>, vector<32x32xf32>,
    return
  }
  func.func @transform_0(%arg0: i32) -> (i32, i32) {
    %c0_i32 = arith.constant 0 : i32
    %c0_i32_0 = arith.constant 0 : i32
    return %arg0, %c0_i32 : i32, i32
  }
  func.func @transform_1(%arg0: i32) -> (i32, i32) {
    %c0_i32 = arith.constant 0 : i32
    %c0_i32_0 = arith.constant 0 : i32
    %c0_i32_1 = arith.constant 0 : i32
    return %c0_i32, %c0_i32_0 : i32, i32
  }
  func.func @transform_2(%arg0: i32) -> (i32, i32) {
    %c0_i32 = arith.constant 0 : i32
    %c0_i32_0 = arith.constant 0 : i32
    %c0_i32_1 = arith.constant 0 : i32
    return %c0_i32, %c0_i32_0 : i32, i32
  }
  func.func @transform_3(%arg0: i32) -> (i32, i32) {
    %c0_i32 = arith.constant 0 : i32
    %c0_i32_0 = arith.constant 0 : i32
    return %arg0, %c0_i32 : i32, i32
  }
  func.func @transform_4(%arg0: i32) -> (i32, i32) {
    %c0_i32 = arith.constant 0 : i32
    %c0_i32_0 = arith.constant 0 : i32
    return %arg0, %c0_i32 : i32, i32
  }
}

module attributes {stable_mosaic.version = 11 : i64} {
  func.func @_ln_mlp_res_kernel(%arg0: i32, %arg1: memref<32x32xf32, #tpu.memory_space<vmem>>, %arg2: memref<1x32xf32, #tpu.memory_space<vmem>>, %arg3: memref<1x32xf32, #tpu.memory_space<vmem>>, %arg4: memref<32x64xbf16, #tpu.memory_space<vmem>>, %arg5: memref<1x64xf32, #tpu.memory_space<vmem>>, %arg6: memref<64x32xbf16, #tpu.memory_space<vmem>>, %arg7: memref<1x32xf32, #tpu.memory_space<vmem>>, %arg8: memref<32x32xf32, #tpu.memory_space<vmem>>) attributes {dimension_semantics = [#tpu.dimension_semantics<parallel>], iteration_bounds = array<i64: 1>, scalar_prefetch = 0 : i64, scratch_operands = 0 : i64, tpu.core_type = #tpu.core_type<tc>, window_params = [{transform_indices = @transform_0, window_bounds = array<i64: 32, 32>}, {pipeline_mode = #tpu.pipeline_mode<synchronous>, transform_indices = @transform_1, window_bounds = array<i64: 1, 32>}, {pipeline_mode = #tpu.pipeline_mode<synchronous>, transform_indices = @transform_2, window_bounds = array<i64: 1, 32>}, {pipeline_mode = #tpu.pipeline_mode<synchronous>, transform_indices = @transform_3, window_bounds = array<i64: 32, 64>}, {pipeline_mode = #tpu.pipeline_mode<synchronous>, transform_indices = @transform_4, window_bounds = array<i64: 1, 64>}, {pipeline_mode = #tpu.pipeline_mode<synchronous>, transform_indices = @transform_5, window_bounds = array<i64: 64, 32>}, {pipeline_mode = #tpu.pipeline_mode<synchronous>, transform_indices = @transform_6, window_bounds = array<i64: 1, 32>}, {transform_indices = @transform_7, window_bounds = array<i64: 32, 32>}]} {
    %c0 = arith.constant 0 : index
    %c0_0 = arith.constant 0 : index
    %0 = vector.load %arg1[%c0, %c0_0] : memref<32x32xf32, #tpu.memory_space<vmem>>, vector<32x32xf32>
    %c0_1 = arith.constant 0 : index
    %c0_2 = arith.constant 0 : index
    %1 = vector.load %arg2[%c0_1, %c0_2] : memref<1x32xf32, #tpu.memory_space<vmem>>, vector<1x32xf32>
    %c0_3 = arith.constant 0 : index
    %c0_4 = arith.constant 0 : index
    %2 = vector.load %arg3[%c0_3, %c0_4] : memref<1x32xf32, #tpu.memory_space<vmem>>, vector<1x32xf32>
    %cst = arith.constant dense<0.000000e+00> : vector<32xf32>
    %3 = vector.multi_reduction <add>, %0, %cst [1] : vector<32x32xf32> to vector<32xf32>
    %4 = vector.shape_cast %3 : vector<32xf32> to vector<32x1xf32>
    %cst_5 = arith.constant 3.200000e+01 : f32
    %5 = vector.broadcast %cst_5 : f32 to vector<32x1xf32>
    %6 = arith.divf %4, %5 : vector<32x1xf32>
    %7 = vector.broadcast %6 : vector<32x1xf32> to vector<32x32xf32>
    %8 = arith.subf %0, %7 : vector<32x32xf32>
    %9 = arith.mulf %8, %8 : vector<32x32xf32>
    %cst_6 = arith.constant dense<0.000000e+00> : vector<32xf32>
    %10 = vector.multi_reduction <add>, %9, %cst_6 [1] : vector<32x32xf32> to vector<32xf32>
    %11 = vector.shape_cast %10 : vector<32xf32> to vector<32x1xf32>
    %cst_7 = arith.constant 3.200000e+01 : f32
    %12 = vector.broadcast %cst_7 : f32 to vector<32x1xf32>
    %13 = arith.divf %11, %12 : vector<32x1xf32>
    %cst_8 = arith.constant 9.99999974E-6 : f32
    %14 = vector.broadcast %cst_8 : f32 to vector<32x1xf32>
    %15 = arith.addf %13, %14 : vector<32x1xf32>
    %16 = math.rsqrt %15 : vector<32x1xf32>
    %17 = vector.broadcast %16 : vector<32x1xf32> to vector<32x32xf32>
    %18 = arith.mulf %8, %17 : vector<32x32xf32>
    %19 = vector.broadcast %1 : vector<1x32xf32> to vector<32x32xf32>
    %20 = arith.mulf %18, %19 : vector<32x32xf32>
    %21 = vector.broadcast %2 : vector<1x32xf32> to vector<32x32xf32>
    %22 = arith.addf %20, %21 : vector<32x32xf32>
    %23 = arith.truncf %22 : vector<32x32xf32> to vector<32x32xbf16>
    %c0_9 = arith.constant 0 : index
    %c0_10 = arith.constant 0 : index
    %24 = vector.load %arg4[%c0_9, %c0_10] : memref<32x64xbf16, #tpu.memory_space<vmem>>, vector<32x64xbf16>
    %cst_11 = arith.constant dense<0.000000e+00> : vector<32x64xf32>
    %25 = tpu.matmul %23, %24, %cst_11 {dimension_numbers = #tpu.dot_dimension_numbers<[1], [0], [0], [1], [0, 0, 1, 1], [], []>} : vector<32x32xbf16>, vector<32x64xbf16>, vector<32x64xf32> -> vector<32x64xf32>
    %c0_12 = arith.constant 0 : index
    %c0_13 = arith.constant 0 : index
    %26 = vector.load %arg5[%c0_12, %c0_13] : memref<1x64xf32, #tpu.memory_space<vmem>>, vector<1x64xf32>
    %27 = vector.broadcast %26 : vector<1x64xf32> to vector<32x64xf32>
    %28 = arith.addf %25, %27 : vector<32x64xf32>
    %cst_14 = arith.constant 5.000000e-01 : f32
    %29 = vector.broadcast %cst_14 : f32 to vector<32x64xf32>
    %30 = arith.mulf %29, %28 : vector<32x64xf32>
    %cst_15 = arith.constant 0.707106769 : f32
    %31 = vector.broadcast %cst_15 : f32 to vector<32x64xf32>
    %32 = arith.mulf %28, %31 : vector<32x64xf32>
    %cst_16 = arith.constant 0.000000e+00 : f32
    %33 = vector.broadcast %cst_16 : f32 to vector<32x64xf32>
    %34 = arith.cmpf oge, %32, %33 : vector<32x64xf32>
    %cst_17 = arith.constant 1.000000e+00 : f32
    %cst_18 = arith.constant -1.000000e+00 : f32
    %35 = vector.broadcast %cst_17 : f32 to vector<32x64xf32>
    %36 = vector.broadcast %cst_18 : f32 to vector<32x64xf32>
    %37 = arith.select %34, %35, %36 : vector<32x64xi1>, vector<32x64xf32>
    %38 = math.absf %32 : vector<32x64xf32>
    %cst_19 = arith.constant 0.327591091 : f32
    %39 = vector.broadcast %cst_19 : f32 to vector<32x64xf32>
    %40 = arith.mulf %39, %38 : vector<32x64xf32>
    %cst_20 = arith.constant 1.000000e+00 : f32
    %41 = vector.broadcast %cst_20 : f32 to vector<32x64xf32>
    %42 = arith.addf %41, %40 : vector<32x64xf32>
    %cst_21 = arith.constant 1.000000e+00 : f32
    %43 = vector.broadcast %cst_21 : f32 to vector<32x64xf32>
    %44 = arith.divf %43, %42 : vector<32x64xf32>
    %cst_22 = arith.constant 1.06140542 : f32
    %45 = vector.broadcast %cst_22 : f32 to vector<32x64xf32>
    %46 = arith.mulf %45, %44 : vector<32x64xf32>
    %cst_23 = arith.constant -1.45315206 : f32
    %47 = vector.broadcast %cst_23 : f32 to vector<32x64xf32>
    %48 = arith.addf %46, %47 : vector<32x64xf32>
    %49 = arith.mulf %48, %44 : vector<32x64xf32>
    %cst_24 = arith.constant 1.42141378 : f32
    %50 = vector.broadcast %cst_24 : f32 to vector<32x64xf32>
    %51 = arith.addf %49, %50 : vector<32x64xf32>
    %52 = arith.mulf %51, %44 : vector<32x64xf32>
    %cst_25 = arith.constant -0.284496725 : f32
    %53 = vector.broadcast %cst_25 : f32 to vector<32x64xf32>
    %54 = arith.addf %52, %53 : vector<32x64xf32>
    %55 = arith.mulf %54, %44 : vector<32x64xf32>
    %cst_26 = arith.constant 0.254829586 : f32
    %56 = vector.broadcast %cst_26 : f32 to vector<32x64xf32>
    %57 = arith.addf %55, %56 : vector<32x64xf32>
    %58 = arith.mulf %57, %44 : vector<32x64xf32>
    %cst_27 = arith.constant 0.000000e+00 : f32
    %59 = vector.broadcast %cst_27 : f32 to vector<32x64xf32>
    %60 = arith.subf %59, %38 : vector<32x64xf32>
    %61 = arith.mulf %60, %38 : vector<32x64xf32>
    %62 = math.exp %61 : vector<32x64xf32>
    %63 = arith.mulf %58, %62 : vector<32x64xf32>
    %cst_28 = arith.constant 1.000000e+00 : f32
    %64 = vector.broadcast %cst_28 : f32 to vector<32x64xf32>
    %65 = arith.subf %64, %63 : vector<32x64xf32>
    %66 = arith.mulf %37, %65 : vector<32x64xf32>
    %cst_29 = arith.constant 1.000000e+00 : f32
    %67 = vector.broadcast %cst_29 : f32 to vector<32x64xf32>
    %68 = arith.addf %67, %66 : vector<32x64xf32>
    %69 = arith.mulf %30, %68 : vector<32x64xf32>
    %70 = arith.truncf %69 : vector<32x64xf32> to vector<32x64xbf16>
    %c0_30 = arith.constant 0 : index
    %c0_31 = arith.constant 0 : index
    %71 = vector.load %arg6[%c0_30, %c0_31] : memref<64x32xbf16, #tpu.memory_space<vmem>>, vector<64x32xbf16>
    %cst_32 = arith.constant dense<0.000000e+00> : vector<32x32xf32>
    %72 = tpu.matmul %70, %71, %cst_32 {dimension_numbers = #tpu.dot_dimension_numbers<[1], [0], [0], [1], [0, 0, 1, 1], [], []>} : vector<32x64xbf16>, vector<64x32xbf16>, vector<32x32xf32> -> vector<32x32xf32>
    %c0_33 = arith.constant 0 : index
    %c0_34 = arith.constant 0 : index
    %73 = vector.load %arg7[%c0_33, %c0_34] : memref<1x32xf32, #tpu.memory_space<vmem>>, vector<1x32xf32>
    %74 = vector.broadcast %73 : vector<1x32xf32> to vector<32x32xf32>
    %75 = arith.addf %72, %74 : vector<32x32xf32>
    %76 = arith.addf %0, %75 : vector<32x32xf32>
    %c0_35 = arith.constant 0 : index
    %c0_36 = arith.constant 0 : index
    %77 = vector.load %arg8[%c0_35, %c0_36] : memref<32x32xf32, #tpu.memory_space<vmem>>, vector<32x32xf32>
    tpu.vector_store %arg8[%c0_35, %c0_36], %76 {strides = array<i32>} : memref<32x32xf32, #tpu.memory_space<vmem>>, vector<32x32xf32>,
    return
  }
  func.func @transform_0(%arg0: i32) -> (i32, i32) {
    %c0_i32 = arith.constant 0 : i32
    %c0_i32_0 = arith.constant 0 : i32
    return %arg0, %c0_i32 : i32, i32
  }
  func.func @transform_1(%arg0: i32) -> (i32, i32) {
    %c0_i32 = arith.constant 0 : i32
    %c0_i32_0 = arith.constant 0 : i32
    %c0_i32_1 = arith.constant 0 : i32
    return %c0_i32, %c0_i32_0 : i32, i32
  }
  func.func @transform_2(%arg0: i32) -> (i32, i32) {
    %c0_i32 = arith.constant 0 : i32
    %c0_i32_0 = arith.constant 0 : i32
    %c0_i32_1 = arith.constant 0 : i32
    return %c0_i32, %c0_i32_0 : i32, i32
  }
  func.func @transform_3(%arg0: i32) -> (i32, i32) {
    %c0_i32 = arith.constant 0 : i32
    %c0_i32_0 = arith.constant 0 : i32
    %c0_i32_1 = arith.constant 0 : i32
    return %c0_i32, %c0_i32_0 : i32, i32
  }
  func.func @transform_4(%arg0: i32) -> (i32, i32) {
    %c0_i32 = arith.constant 0 : i32
    %c0_i32_0 = arith.constant 0 : i32
    %c0_i32_1 = arith.constant 0 : i32
    return %c0_i32, %c0_i32_0 : i32, i32
  }
  func.func @transform_5(%arg0: i32) -> (i32, i32) {
    %c0_i32 = arith.constant 0 : i32
    %c0_i32_0 = arith.constant 0 : i32
    %c0_i32_1 = arith.constant 0 : i32
    return %c0_i32, %c0_i32_0 : i32, i32
  }
  func.func @transform_6(%arg0: i32) -> (i32, i32) {
    %c0_i32 = arith.constant 0 : i32
    %c0_i32_0 = arith.constant 0 : i32
    %c0_i32_1 = arith.constant 0 : i32
    return %c0_i32, %c0_i32_0 : i32, i32
  }
  func.func @transform_7(%arg0: i32) -> (i32, i32) {
    %c0_i32 = arith.constant 0 : i32
    %c0_i32_0 = arith.constant 0 : i32
    return %arg0, %c0_i32 : i32, i32
  }
}

module attributes {stable_mosaic.version = 11 : i64} {
  func.func @_linear_kernel(%arg0: i32, %arg1: memref<32x32xf32, #tpu.memory_space<vmem>>, %arg2: memref<32x48xbf16, #tpu.memory_space<vmem>>, %arg3: memref<1x48xf32, #tpu.memory_space<vmem>>, %arg4: memref<32x48xf32, #tpu.memory_space<vmem>>) attributes {dimension_semantics = [#tpu.dimension_semantics<parallel>], iteration_bounds = array<i64: 1>, scalar_prefetch = 0 : i64, scratch_operands = 0 : i64, tpu.core_type = #tpu.core_type<tc>, window_params = [{transform_indices = @transform_0, window_bounds = array<i64: 32, 32>}, {pipeline_mode = #tpu.pipeline_mode<synchronous>, transform_indices = @transform_1, window_bounds = array<i64: 32, 48>}, {pipeline_mode = #tpu.pipeline_mode<synchronous>, transform_indices = @transform_2, window_bounds = array<i64: 1, 48>}, {transform_indices = @transform_3, window_bounds = array<i64: 32, 48>}]} {
    %c0 = arith.constant 0 : index
    %c0_0 = arith.constant 0 : index
    %0 = vector.load %arg1[%c0, %c0_0] : memref<32x32xf32, #tpu.memory_space<vmem>>, vector<32x32xf32>
    %1 = arith.truncf %0 : vector<32x32xf32> to vector<32x32xbf16>
    %c0_1 = arith.constant 0 : index
    %c0_2 = arith.constant 0 : index
    %2 = vector.load %arg2[%c0_1, %c0_2] : memref<32x48xbf16, #tpu.memory_space<vmem>>, vector<32x48xbf16>
    %cst = arith.constant dense<0.000000e+00> : vector<32x48xf32>
    %3 = tpu.matmul %1, %2, %cst {dimension_numbers = #tpu.dot_dimension_numbers<[1], [0], [0], [1], [0, 0, 1, 1], [], []>} : vector<32x32xbf16>, vector<32x48xbf16>, vector<32x48xf32> -> vector<32x48xf32>
    %c0_3 = arith.constant 0 : index
    %c0_4 = arith.constant 0 : index
    %4 = vector.load %arg3[%c0_3, %c0_4] : memref<1x48xf32, #tpu.memory_space<vmem>>, vector<1x48xf32>
    %5 = vector.broadcast %4 : vector<1x48xf32> to vector<32x48xf32>
    %6 = arith.addf %3, %5 : vector<32x48xf32>
    %c0_5 = arith.constant 0 : index
    %c0_6 = arith.constant 0 : index
    %7 = vector.load %arg4[%c0_5, %c0_6] : memref<32x48xf32, #tpu.memory_space<vmem>>, vector<32x48xf32>
    tpu.vector_store %arg4[%c0_5, %c0_6], %6 {strides = array<i32>} : memref<32x48xf32, #tpu.memory_space<vmem>>, vector<32x48xf32>,
    return
  }
  func.func @transform_0(%arg0: i32) -> (i32, i32) {
    %c0_i32 = arith.constant 0 : i32
    %c0_i32_0 = arith.constant 0 : i32
    return %arg0, %c0_i32 : i32, i32
  }
  func.func @transform_1(%arg0: i32) -> (i32, i32) {
    %c0_i32 = arith.constant 0 : i32
    %c0_i32_0 = arith.constant 0 : i32
    %c0_i32_1 = arith.constant 0 : i32
    return %c0_i32, %c0_i32_0 : i32, i32
  }
  func.func @transform_2(%arg0: i32) -> (i32, i32) {
    %c0_i32 = arith.constant 0 : i32
    %c0_i32_0 = arith.constant 0 : i32
    %c0_i32_1 = arith.constant 0 : i32
    return %c0_i32, %c0_i32_0 : i32, i32
  }
  func.func @transform_3(%arg0: i32) -> (i32, i32) {
    %c0_i32 = arith.constant 0 : i32
    %c0_i32_0 = arith.constant 0 : i32
    return %arg0, %c0_i32 : i32, i32
  }
}

</mosaic_0001>

<bundles_post_ra>
// kernel: pxt_forward.11
= control target key start
LH: loop header
LB: loop body
LE: loop exit
PB: predicated region body
PF: predicated region fallthrough
CT: control target
= control target key end

     0   :  { %vm27_vm0 = vcmask 261120   ;;  %vm197_vm1 = vcmask 781312   ;;  %s322_s0 = inlined_call_operand.vmem [shape: f32[32,32], index: 0, kind: input, shape index: {}]   ;;  %s323_s3 = inlined_call_operand.vmem [shape: bf16[32,96], index: 3, kind: input, shape index: {}]   ;;  %s324_s1 = inlined_call_operand.vmem [shape: f32[1,32], index: 1, kind: input, shape index: {}]   ;;  %s325_s2 = inlined_call_operand.vmem [shape: f32[1,32], index: 2, kind: input, shape index: {}]   ;;  %s326_s4 = inlined_call_operand.vmem [shape: f32[1,96], index: 4, kind: input, shape index: {}]   ;;  %s327_s5 = inlined_call_operand.vmem [shape: bf16[32,96], index: 5, kind: output, shape index: {}]  }
   0x1   :  { %v21_v0 = vld [vmem:[%s322_s0] sm:$0xff]  ;;  %v23_v1 = vld [vmem:[%s322_s0 + $0x10] sm:$0xff]  ;;  %v22_v2 = vld [vmem:[%s322_s0 + $0x8] sm:$0xff] }
   0x2   :  { %v28_v3 = vsel %vm27_vm0, %v21_v0, 0.0  ;;  %v34_v4 = vsel %vm27_vm0, %v23_v1, 0.0  ;;  %v24_v5 = vld [vmem:[%s322_s0 + $0x18] sm:$0xff]  ;;  %v31_v6 = vsel %vm27_vm0, %v22_v2, 0.0  ;;  %v233_v28 = vld [vmem:[%s323_s3] sm:$0xff]   ;;  %v234_v29 = vld [vmem:[%s323_s3 + $0x8] sm:$0xff]  }
   0x3   :  { %29 = vadd.xlane.f32.xlu0 %v28_v3  ;;  %35 = vadd.xlane.f32.xlu1 %v34_v4  ;;  %v37_v7 = vsel %vm27_vm0, %v24_v5, 0.0  ;;  %v206_v44 = vld [vmem:[%s324_s1] ss:$0 sm:$0xff] }
   0x4   :  { %225 = vmatprep.subr.bf16.mxu0 %v233_v28  ;;  %v207_v50 = vld [vmem:[%s325_s2] ss:$0 sm:$0xff] }
   0x5   :  { %226 = vmatpush3.bf16.msra.mxu0 %v233_v28  ;;  %v208_v62 = vld [vmem:[%s326_s4] ss:$0 sm:$0xff] }
   0x6   :  { %227 = vmatprep.subr.bf16.mxu0 %v234_v29 }
   0x7   :  { %32 = vadd.xlane.f32.xlu0 %v31_v6  ;;  %38 = vadd.xlane.f32.xlu1 %v37_v7 }
   0x9   :  { %228 = vmatpush3.bf16.msra.mxu0 %v234_v29 }
  0x90   :  { %v30_v8 = vpop.xlane.xlu0 %29  ;;  %v36_v9 = vpop.xlane.xlu1 %35 }
  0x91   :  { %v41_v10 = vmul.f32 0.03125, %v30_v8  ;;  %v43_v11 = vmul.f32 0.03125, %v36_v9 }
  0x93   :  { %v45_v12 = vsub.f32 %v21_v0, %v41_v10  ;;  %v47_v13 = vsub.f32 %v23_v1, %v43_v11 }
  0x94   :  { %v33_v14 = vpop.xlane.xlu0 %32  ;;  %v39_v15 = vpop.xlane.xlu1 %38 }
  0x95   :  { %v42_v16 = vmul.f32 0.03125, %v33_v14  ;;  %v44_v17 = vmul.f32 0.03125, %v39_v15  ;;  %v49_v18 = vmul.f32 %v45_v12, %v45_v12  ;;  %v51_v19 = vmul.f32 %v47_v13, %v47_v13 }
  0x97   :  { %v46_v20 = vsub.f32 %v22_v2, %v42_v16  ;;  %v48_v21 = vsub.f32 %v24_v5, %v44_v17  ;;  %v53_v22 = vsel %vm27_vm0, %v49_v18, 0.0  ;;  %v59_v23 = vsel %vm27_vm0, %v51_v19, 0.0 }
  0x98   :  { %54 = vadd.xlane.f32.xlu0 %v53_v22 }
  0x99   :  { %v50_v24 = vmul.f32 %v46_v20, %v46_v20  ;;  %v52_v25 = vmul.f32 %v48_v21, %v48_v21 }
  0x9b   :  { %v56_v26 = vsel %vm27_vm0, %v50_v24, 0.0  ;;  %v62_v27 = vsel %vm27_vm0, %v52_v25, 0.0 }
  0x9c   :  { %60 = vadd.xlane.f32.xlu0 %v59_v23  ;;  %57 = vadd.xlane.f32.xlu1 %v56_v26 }
  0xa0   :  { %63 = vadd.xlane.f32.xlu1 %v62_v27 }
 0x125   :  { %v55_v30 = vpop.xlane.xlu0 %54 }
 0x126   :  { %v65_v31 = vmul.f32 0.03125, %v55_v30 }
 0x128   :  { %v69_v32 = vadd.f32 1e-05, %v65_v31 }
 0x129   :  { %v58_v33 = vpop.xlane.xlu1 %57  ;;  %v61_v34 = vpop.xlane.xlu0 %60 }
 0x12a   :  { %235 = vrsqrt.f32 %v69_v32  ;;  %v66_v35 = vmul.f32 0.03125, %v58_v33  ;;  %v67_v36 = vmul.f32 0.03125, %v61_v34 }
 0x12c   :  { %v70_v37 = vadd.f32 1e-05, %v66_v35  ;;  %v71_v38 = vadd.f32 1e-05, %v67_v36 }
 0x12d   :  { %v64_v39 = vpop.xlane.xlu1 %63 }
 0x12e   :  { %237 = vrsqrt.f32 %v70_v37  ;;  %v68_v40 = vmul.f32 0.03125, %v64_v39 }
 0x12f   :  { %239 = vrsqrt.f32 %v71_v38 }
 0x130   :  { %v72_v41 = vadd.f32 1e-05, %v68_v40 }
 0x132   :  { %241 = vrsqrt.f32 %v72_v41 }
 0x134   :  { %v236_v42 = vpop.eup %235 }
 0x135   :  { %v77_v43 = vmul.f32 %v236_v42, %v45_v12 }
 0x137   :  { %v87_v48 = vmul.f32 %v206_v44, %v77_v43 }
 0x138   :  { %v238_v45 = vpop.eup %237 }
 0x139   :  { %v240_v46 = vpop.eup %239  ;;  %v78_v47 = vmul.f32 %v238_v45, %v46_v20  ;;  %v97_v54 = vadd.f32 %v207_v50, %v87_v48 }
 0x13a   :  { %v79_v49 = vmul.f32 %v240_v46, %v47_v13 }
 0x13b   :  { %v88_v51 = vmul.f32 %v206_v44, %v78_v47 }
 0x13c   :  { %v242_v52 = vpop.eup %241  ;;  %v89_v56 = vmul.f32 %v206_v44, %v79_v49 }
 0x13d   :  { %v80_v53 = vmul.f32 %v242_v52, %v48_v21  ;;  %v98_v55 = vadd.f32 %v207_v50, %v88_v51 }
 0x13e   :  { %v99_v59 = vadd.f32 %v207_v50, %v89_v56 }
 0x13f   :  { %v101_v57 = vpack.c.bf16 %v98_v55, %v97_v54  ;;  %v90_v58 = vmul.f32 %v206_v44, %v80_v53 }
 0x141   :  { %229 = vmatprep.mubr.msk.bf16.mxu0 %vm27_vm0, %v101_v57  ;;  %v100_v60 = vadd.f32 %v207_v50, %v90_v58 }
 0x143   :  { %v102_v61 = vpack.c.bf16 %v100_v60, %v99_v59 }
 0x145   :  { %230 = vmatmul.mubr.msk.bf16.vlgmr.msra.gmra.mrb[0].mxu0 %vm27_vm0, %v102_v61 }
 0x218   :  { %v231_v63 = vpop.f32.mrb[0].mxu0 }
 0x219   :  { %v175_v0 = vadd.f32 %v231_v63, %v208_v62  ;;  %v166_v1 = vpop.f32.mrb[1].mxu0 }
 0x21a   :  { %v167_v2 = vadd.f32 %v208_v62, %v166_v1  ;;  %v232_v3 = vpop.f32.mrb[2].mxu0 }
 0x21b   :  { %v219_v4 = vpack.c.bf16 %v175_v0, %v175_v0  ;;  %v178_v5 = vadd.f32 %v232_v3, %v208_v62  ;;  %v169_v6 = vpop.f32.mrb[3].mxu0 }
 0x21c   :  { %v217_v7 = vpack.c.bf16 %v167_v2, %v167_v2  ;;  %v170_v8 = vadd.f32 %v208_v62, %v169_v6 }
 0x21d   :  { %200 = vst.msk [vmem:[%s327_s5 + $0x8] sm:$0xf] %vm197_vm1, %v219_v4  ;;  %v220_v9 = vpack.c.bf16 %v178_v5, %v178_v5 }
 0x21e   :  { %198 = vst.msk [vmem:[%s327_s5] sm:$0xf] %vm197_vm1, %v217_v7  ;;  %v218_v10 = vpack.c.bf16 %v170_v8, %v170_v8 }
 0x21f   :  { %201 = vst.msk [vmem:[%s327_s5 + $0xc] sm:$0xf] %vm197_vm1, %v220_v9 }
 0x220   :  { %199 = vst.msk [vmem:[%s327_s5 + $0x4] sm:$0xf] %vm197_vm1, %v218_v10 }

// kernel: pxt_forward.10
= control target key start
LH: loop header
LB: loop body
LE: loop exit
PB: predicated region body
PF: predicated region fallthrough
CT: control target
= control target key end

     0   :  { %vm52_vm0 = vcmask 392192   ;;  %vm108_vm1 = vcmask 261120   ;;  %s197_s1 = inlined_call_operand.vmem [shape: bf16[48,32], index: 1, kind: input, shape index: {}]   ;;  %s198_s0 = inlined_call_operand.vmem [shape: f32[32,48], index: 0, kind: input, shape index: {}]   ;;  %s199_s2 = inlined_call_operand.vmem [shape: f32[1,32], index: 2, kind: input, shape index: {}]   ;;  %s200_s3 = inlined_call_operand.vmem [shape: f32[32,32], index: 3, kind: output, shape index: {}]  }
   0x1   :  { %v138_v0 = vld [vmem:[%s197_s1] sm:$0xff]   ;;  %v139_v1 = vld [vmem:[%s197_s1 + $0x8] sm:$0xff]   ;;  %v140_v4 = vld [vmem:[%s197_s1 + $0x10] sm:$0xff]  }
   0x2   :  { %128 = vmatprep.subr.bf16.mxu0 %v138_v0  ;;  %v15_v2 = vld [vmem:[%s198_s0] sm:$0xff]  ;;  %v16_v3 = vld [vmem:[%s198_s0 + $0x8] sm:$0xff]  ;;  %v17_v6 = vld [vmem:[%s198_s0 + $0x10] sm:$0xff] }
   0x3   :  { %129 = vmatpush3.bf16.msra.mxu0 %v138_v0  ;;  %v19_v5 = vpack.c.bf16 %v16_v3, %v15_v2  ;;  %v18_v7 = vld [vmem:[%s198_s0 + $0x18] sm:$0xff]  ;;  %v117_v9 = vld [vmem:[%s199_s2] ss:$0 sm:$0xff] }
   0x4   :  { %130 = vmatprep.subr.bf16.mxu0 %v139_v1  ;;  %v20_v8 = vpack.c.bf16 %v18_v7, %v17_v6 }
   0x5   :  { %134 = vmatprep.mubr.msk.bf16.mxu0 %vm52_vm0, %v19_v5 }
   0x7   :  { %131 = vmatpush3.bf16.msra.mxu0 %v139_v1 }
   0x8   :  { %132 = vmatprep.subr.bf16.mxu0 %v140_v4 }
   0xb   :  { %133 = vmatpush3.bf16.msra.mxu0 %v140_v4 }
   0xe   :  { %135 = vmatmul.mubr.msk.bf16.vlgmr.msra.gmra.mrb[0].mxu0 %vm52_vm0, %v20_v8 }
  0xe1   :  { %v136_v10 = vpop.f32.mrb[0].mxu0 }
  0xe2   :  { %v102_v11 = vadd.f32 %v136_v10, %v117_v9  ;;  %v93_v12 = vpop.f32.mrb[1].mxu0 }
  0xe3   :  { %v94_v13 = vadd.f32 %v117_v9, %v93_v12  ;;  %v137_v14 = vpop.f32.mrb[2].mxu0 }
  0xe4   :  { %111 = vst.msk [vmem:[%s200_s3 + $0x10] sm:$0xff] %vm108_vm1, %v102_v11  ;;  %v105_v15 = vadd.f32 %v137_v14, %v117_v9  ;;  %v96_v16 = vpop.f32.mrb[3].mxu0 }
  0xe5   :  { %109 = vst.msk [vmem:[%s200_s3] sm:$0xff] %vm108_vm1, %v94_v13  ;;  %v97_v17 = vadd.f32 %v117_v9, %v96_v16 }
  0xe6   :  { %112 = vst.msk [vmem:[%s200_s3 + $0x18] sm:$0xff] %vm108_vm1, %v105_v15 }
  0xe7   :  { %110 = vst.msk [vmem:[%s200_s3 + $0x8] sm:$0xff] %vm108_vm1, %v97_v17 }

// kernel: pxt_forward.12
= control target key start
LH: loop header
LB: loop body
LE: loop exit
PB: predicated region body
PF: predicated region fallthrough
CT: control target
= control target key end

     0   :  { %s782_s12 = smov 0   ;;  %s784_s13 = smov 0   ;;  %s846_s0 = inlined_call_operand.vmem [shape: bf16[8,16,8], index: 0, kind: input, shape index: {}]   ;;  %s847_s1 = inlined_call_operand.vmem [shape: bf16[8,16,8], index: 1, kind: input, shape index: {}]   ;;  %s848_s2 = inlined_call_operand.vmem [shape: bf16[8,16,8], index: 2, kind: input, shape index: {}]   ;;  %s849_s3 = inlined_call_operand.vmem [shape: bf16[8,16,8], index: 3, kind: output, shape index: {}]  }
   0x1   :  { %s786_s14 = smov 0  }
   0x2 LB: > { %s32_s15 = sadd.s32 1, %s752_s13  ;;  %p649_p0 = scmp.ge.s32.totalorder %s756_s14, 1  ;;  %s756_s14 = sphi %s786_s14, %s13_s14   ;;  %s752_s13 = sphi %s784_s13, %s851_s13   ;;  %s748_s12 = sphi %s782_s12, %s850_s12  }
   0x3   : > { %p34_p1 = scmp.ge.s32.totalorder %s32_s15, 8  ;;  %p199_p2 = scmp.lt.s32.totalorder %s756_s14, 9 }
   0x5   : > { %s853_s15 = smov (%p34_p1, %s32_s15), 0  ;;  %p200_p3 = pnand %p649_p0, %p199_p2 }
   0x6   : > { %p250_p4 = scmp.lt.s32.totalorder (!%p200_p3), %s748_s12, 7  ;;  %vm299_vm0 = vcmask (!%p200_p3), 64512   ;;  %v758_v0 = vmov (!%p200_p3), 0.0   ;;  %vm759_vm1 = vmmov (!%p200_p3), 0   ;;  %vm294_vm2 = vcmask (!%p200_p3), 7168  }
   0x7   : > { %203 = sbr.rel (%p200_p3) target bundleno = 829 (0x33d), region = 32  ;;  %677 = vmatprep.subr.bf16.mxu0 (!%p200_p3), %v758_v0  ;;  %300 = vst.msk [vmem:[#allocation4] sm:$0xff] (!%p200_p3), %vm299_vm0, %v758_v0  ;;  %301 = vst.msk [vmem:[#allocation4 + $0x8] sm:$0xff] (!%p200_p3), %vm299_vm0, %v758_v0  ;;  %679 = vmatprep.mubr.msk.bf16.mxu0 (!%p200_p3), %vm759_vm1, %v758_v0  ;;  %v760_v4 = vmov (!%p200_p3), -inf   ;;  %vm370_vm3 = vcmask (!%p200_p3), 130048   ;;  %v761_v13 = vmov (!%p200_p3), 0  }
   0x8   : > { %683 = vmatprep.subr.bf16.mxu1 (!%p200_p3), %v758_v0  ;;  %685 = vmatprep.mubr.msk.bf16.mxu1 (!%p200_p3), %vm759_vm1, %v758_v0  ;;  %295 = vst.msk [vmem:[#allocation2] sm:$0xff] (!%p200_p3), %vm294_vm2, %v760_v4  ;;  %296 = vst.msk [vmem:[#allocation2 + $0x8] sm:$0xff] (!%p200_p3), %vm294_vm2, %v760_v4  ;;  %vm516_vm4 = vcmask (!%p200_p3), 60416  }
   0x9   : > { %297 = vst.msk [vmem:[#allocation3] sm:$0xff] (!%p200_p3), %vm294_vm2, %v758_v0  ;;  %298 = vst.msk [vmem:[#allocation3 + $0x8] sm:$0xff] (!%p200_p3), %vm294_vm2, %v758_v0  ;;  %717 = vset.pattern.permute.xlu1 (!%p200_p3), %v761_v13  ;;  %718 = vset.pattern.permute.xlu0 (!%p200_p3), %v761_v13 }
   0xe   : > { %s855_s12 = smov (!%p250_p4, %s748_s12), 7  ;;  %v416_v50 = vld [vmem:[#allocation4] sm:$0xff]  ;;  %v417_v52 = vld [vmem:[#allocation4 + $0x8] sm:$0xff] }
   0xf   : > { %s802_s16 = sshll.u32 %s855_s12, 3  ;;  %v368_v14 = vld [vmem:[#allocation2] sm:$0xff]  ;;  %v369_v17 = vld [vmem:[#allocation2 + $0x8] sm:$0xff] }
  0x10   : > { %s267_s19 = scalar_lea.vmem %s847_s1, %s802_s16  ;;  %s257_s22 = scalar_lea.vmem %s846_s0, %s802_s16  ;;  %v401_v38 = vld [vmem:[#allocation3] sm:$0xff]  ;;  %v402_v41 = vld [vmem:[#allocation3 + $0x8] sm:$0xff] }
  0x11   : > { %v719_v1 = vld [vmem:[%s267_s19] sm:$0xff]   ;;  %s277_s25 = scalar_lea.vmem %s848_s2, %s802_s16  ;;  %s287_s28 = scalar_lea.vmem %s849_s3, %s802_s16 }
  0x12   : > { %v323_v2 = vsel %vm299_vm0, %v719_v1, 0  ;;  %v720_v3 = vld [vmem:[%s257_s22] sm:$0xff]  }
  0x13   : > { %678 = vmatpush3.bf16.xpose.msra.mxu0 %v323_v2  ;;  %v721_v22 = vld [vmem:[%s277_s25] sm:$0xff]  }
  0x14   : > { %684 = vmatpush3.bf16.msra.mxu1 %v721_v22 }
  0x1a   : > { %680 = vmatmul.mubr.msk.bf16.vlgmr.msra.gmra.mrb[0].mxu0 %vm299_vm0, %v720_v3 }
  0xed   : > { %v359_v5 = vpop.f32.mrb[0].mxu0 }
  0xee   : > { %v366_v6 = vmul.f32 0.35355338, %v359_v5  ;;  %v681_v7 = vpop.f32.mrb[1].mxu0 }
  0xef   : > { %v362_v8 = vpop.f32.mrb[2].mxu0 }
  0xf0   : > { %v367_v9 = vmul.f32 0.35355338, %v362_v8  ;;  %v682_v10 = vpop.f32.mrb[3].mxu0  ;;  %v371_v11 = vsel %vm370_vm3, %v366_v6, -inf }
  0xf1   : > { %372 = vmax.xlane.f32.xlu0 %v371_v11 }
  0xf2   : > { %v374_v12 = vsel %vm370_vm3, %v367_v9, -inf }
  0xf5   : > { %375 = vmax.xlane.f32.xlu0 %v374_v12 }
 0x17e   : > { %v373_v15 = vpop.xlane.xlu0 %372 }
 0x17f   : > { %v377_v16 = vmax.f32 %v368_v14, %v373_v15 }
 0x181   : > { %v379_v18 = vsub.f32 %v368_v14, %v377_v16  ;;  %485 = vst.msk [vmem:[#allocation2] sm:$0xff] %vm294_vm2, %v377_v16  ;;  %387 = vperm.xlu1 %717, %v377_v16  }
 0x182   : > { %v376_v19 = vpop.xlane.xlu0 %375 }
 0x183   : > { %v378_v20 = vmax.f32 %v369_v17, %v376_v19  ;;  %v381_v35 = vmul.f32 1.442695, %v379_v18 }
 0x185   : > { %v380_v21 = vsub.f32 %v369_v17, %v378_v20  ;;  %486 = vst.msk [vmem:[#allocation2 + $0x8] sm:$0xff] %vm294_vm2, %v378_v20  ;;  %392 = vperm.xlu1 %717, %v378_v20  }
 0x187   : > { %v383_v34 = vmul.f32 1.442695, %v380_v21 }
 0x200   : > { %v388_v23 = vpop.permute.xlu1 %387 }
 0x201   : > { %v395_v24 = vsub.f32 %v366_v6, %v388_v23 }
 0x203   : > { %v397_v25 = vmul.f32 1.442695, %v395_v24 }
 0x204   : > { %v393_v26 = vpop.permute.xlu1 %392 }
 0x205   : > { %722 = vpow2.f32 %v397_v25  ;;  %v396_v27 = vsub.f32 %v367_v9, %v393_v26 }
 0x207   : > { %v399_v28 = vmul.f32 1.442695, %v396_v27 }
 0x209   : > { %724 = vpow2.f32 %v399_v28 }
 0x20a   : > { %726 = vpow2.f32 %v383_v34 }
 0x20b   : > { %728 = vpow2.f32 %v381_v35 }
 0x20f   : > { %v723_v29 = vpop.eup %722 }
 0x210   : > { %v405_v30 = vsel %vm370_vm3, %v723_v29, 0.0 }
 0x211   : > { %406 = vadd.xlane.f32.xlu0 %v405_v30 }
 0x213   : > { %v725_v31 = vpop.eup %724 }
 0x214   : > { %v408_v32 = vsel %vm370_vm3, %v725_v31, 0.0  ;;  %v430_v33 = vpack.c.bf16 %v725_v31, %v723_v29  ;;  %v727_v36 = vpop.eup %726 }
 0x215   : > { %409 = vadd.xlane.f32.xlu1 %v408_v32  ;;  %v729_v37 = vpop.eup %728  ;;  %v404_v43 = vmul.f32 %v727_v36, %v402_v41 }
 0x216   : > { %686 = vmatmul.mubr.msk.bf16.vlgmr.msra.gmra.mrb[0].mxu1 %vm370_vm3, %v430_v33  ;;  %v403_v39 = vmul.f32 %v729_v37, %v401_v38 }
 0x226   : > { %425 = vperm.xlu1 %717, %v727_v36  }
 0x227   : > { %420 = vperm.xlu0 %718, %v729_v37  }
 0x29e   : > { %v407_v40 = vpop.xlane.xlu0 %406 }
 0x29f   : > { %v411_v42 = vadd.f32 %v407_v40, %v403_v39 }
 0x2a1   : > { %414 = vst.msk [vmem:[#allocation3] sm:$0xff] %vm294_vm2, %v411_v42 }
 0x2a2   : > { %v410_v44 = vpop.xlane.xlu1 %409 }
 0x2a3   : > { %v412_v45 = vadd.f32 %v410_v44, %v404_v43 }
 0x2a5   : > { %415 = vst.msk [vmem:[#allocation3 + $0x8] sm:$0xff] %vm294_vm2, %v412_v45 }
 0x2a6   : > { %v421_v51 = vpop.permute.xlu0 %420  ;;  %v426_v53 = vpop.permute.xlu1 %425 }
 0x2a7   : > { %v428_v54 = vmul.f32 %v421_v51, %v416_v50  ;;  %v429_v56 = vmul.f32 %v426_v53, %v417_v52 }
 0x2a8   : > { %v490_v46 = vld [vmem:[#allocation3] sm:$0xff] }
 0x2a9   : > { %730 = vrcp.f32 %v490_v46 }
 0x2ac   : > { %v491_v47 = vld [vmem:[#allocation3 + $0x8] sm:$0xff] }
 0x2ad   : > { %732 = vrcp.f32 %v491_v47 }
 0x2b3   : > { %v731_v48 = vpop.eup %730 }
 0x2b4   : > { %498 = vperm.xlu0 %718, %v731_v48  }
 0x2b7   : > { %v733_v49 = vpop.eup %732 }
 0x2b8   : > { %503 = vperm.xlu0 %718, %v733_v49  }
 0x2e9   : > { %v474_v55 = vpop.f32.mrb[0].mxu1 }
 0x2ea   : > { %v481_v57 = vadd.f32 %v474_v55, %v428_v54  ;;  %v687_v58 = vpop.f32.mrb[1].mxu1 }
 0x2eb   : > { %v477_v59 = vpop.f32.mrb[2].mxu1 }
 0x2ec   : > { %483 = vst.msk [vmem:[#allocation4] sm:$0xff] %vm299_vm0, %v481_v57  ;;  %v482_v60 = vadd.f32 %v477_v59, %v429_v56  ;;  %v688_v61 = vpop.f32.mrb[3].mxu1 }
 0x2ee   : > { %484 = vst.msk [vmem:[#allocation4 + $0x8] sm:$0xff] %vm299_vm0, %v482_v60 }
 0x2f3   : > { %v494_v62 = vld [vmem:[#allocation4] sm:$0xff] }
 0x2f5   : > { %v495_v2 = vld [vmem:[#allocation4 + $0x8] sm:$0xff] }
 0x333   : > { %v499_v63 = vpop.permute.xlu0 %498 }
 0x334   : > { %v506_v0 = vmul.f32 %v499_v63, %v494_v62 }
 0x336   : > { %v671_v1 = vpack.c.bf16 %v506_v0, %v506_v0 }
 0x337   : > { %v504_v3 = vpop.permute.xlu0 %503 }
 0x338   : > { %517 = vst.msk [vmem:[%s287_s28] sm:$0xf] %vm516_vm4, %v671_v1  ;;  %v507_v4 = vmul.f32 %v504_v3, %v495_v2 }
 0x33a   : > { %v672_v5 = vpack.c.bf16 %v507_v4, %v507_v4 }
 0x33c   : > { %518 = vst.msk [vmem:[%s287_s28 + $0x4] sm:$0xf] %vm516_vm4, %v672_v5 }
 0x33d PF: > { %s13_s14 = sadd.s32 1, %s756_s14   ;;  %s850_s12 = smov %s752_s13 }
 0x33e   : > { %p10_p5 = scmp.ge.s32.totalorder %s13_s14, 10   ;;  %s851_s13 = smov %s853_s15 }
 0x340   :  { %12 = sbr.rel (!%p10_p5) target bundleno = 2 (0x2), region = 76 }

// kernel: pxt_forward.13
= control target key start
LH: loop header
LB: loop body
LE: loop exit
PB: predicated region body
PF: predicated region fallthrough
CT: control target
= control target key end

     0   :  { %vm48_vm0 = vcmask 261120   ;;  %s224_s1 = inlined_call_operand.vmem [shape: bf16[32,32], index: 1, kind: input, shape index: {}]   ;;  %s225_s0 = inlined_call_operand.vmem [shape: bf16[32,32], index: 0, kind: input, shape index: {}]   ;;  %s226_s3 = inlined_call_operand.vmem [shape: f32[32,32], index: 3, kind: input, shape index: {}, may-alias: {3,4}]   ;;  %s227_s2 = inlined_call_operand.vmem [shape: f32[1,32], index: 2, kind: input, shape index: {}]   ;;  %s228_s4 = inlined_call_operand.vmem [shape: f32[32,32], index: 4, kind: output, shape index: {}, may-alias: {3,4}]  }
   0x1   :  { %v150_v0 = vld [vmem:[%s224_s1] sm:$0xff]   ;;  %v151_v1 = vld [vmem:[%s224_s1 + $0x8] sm:$0xff]   ;;  %v106_v4 = vld [vmem:[%s226_s3 + $0x10] sm:$0xff] }
   0x2   :  { %142 = vmatprep.subr.bf16.mxu0 %v150_v0  ;;  %v152_v2 = vld [vmem:[%s225_s0] sm:$0xff]   ;;  %v153_v3 = vld [vmem:[%s225_s0 + $0x8] sm:$0xff]   ;;  %v107_v8 = vld [vmem:[%s226_s3 + $0x18] sm:$0xff] }
   0x3   :  { %143 = vmatpush3.bf16.msra.mxu0 %v150_v0  ;;  %146 = vmatprep.mubr.msk.bf16.mxu0 %vm48_vm0, %v152_v2  ;;  %v104_v5 = vld [vmem:[%s226_s3] sm:$0xff]  ;;  %v105_v11 = vld [vmem:[%s226_s3 + $0x8] sm:$0xff] }
   0x4   :  { %144 = vmatprep.subr.bf16.mxu0 %v151_v1  ;;  %v137_v7 = vld [vmem:[%s227_s2] ss:$0 sm:$0xff] }
   0x7   :  { %145 = vmatpush3.bf16.msra.mxu0 %v151_v1 }
   0xa   :  { %147 = vmatmul.mubr.msk.bf16.vlgmr.msra.gmra.mrb[0].mxu0 %vm48_vm0, %v153_v3 }
  0xdd   :  { %v148_v6 = vpop.f32.mrb[0].mxu0 }
  0xde   :  { %v110_v9 = vadd.f32 %v148_v6, %v106_v4  ;;  %v89_v10 = vpop.f32.mrb[1].mxu0 }
  0xdf   :  { %v108_v12 = vadd.f32 %v104_v5, %v89_v10  ;;  %v149_v13 = vpop.f32.mrb[2].mxu0 }
  0xe0   :  { %v121_v14 = vadd.f32 %v137_v7, %v110_v9  ;;  %v111_v15 = vadd.f32 %v149_v13, %v107_v8  ;;  %v92_v16 = vpop.f32.mrb[3].mxu0 }
  0xe1   :  { %v119_v17 = vadd.f32 %v137_v7, %v108_v12  ;;  %v109_v18 = vadd.f32 %v105_v11, %v92_v16 }
  0xe2   :  { %125 = vst.msk [vmem:[%s228_s4 + $0x10] sm:$0xff] %vm48_vm0, %v121_v14  ;;  %v122_v19 = vadd.f32 %v137_v7, %v111_v15 }
  0xe3   :  { %123 = vst.msk [vmem:[%s228_s4] sm:$0xff] %vm48_vm0, %v119_v17  ;;  %v120_v20 = vadd.f32 %v137_v7, %v109_v18 }
  0xe4   :  { %126 = vst.msk [vmem:[%s228_s4 + $0x18] sm:$0xff] %vm48_vm0, %v122_v19 }
  0xe5   :  { %124 = vst.msk [vmem:[%s228_s4 + $0x8] sm:$0xff] %vm48_vm0, %v120_v20 }

// kernel: pxt_forward.19
= control target key start
LH: loop header
LB: loop body
LE: loop exit
PB: predicated region body
PF: predicated region fallthrough
CT: control target
= control target key end

     0   :  { %vm44_vm0 = vcmask 261120   ;;  %vm100_vm1 = vcmask 392192   ;;  %s181_s1 = inlined_call_operand.vmem [shape: bf16[32,48], index: 1, kind: input, shape index: {}]   ;;  %s182_s0 = inlined_call_operand.vmem [shape: f32[32,32], index: 0, kind: input, shape index: {}]   ;;  %s183_s2 = inlined_call_operand.vmem [shape: f32[1,48], index: 2, kind: input, shape index: {}]   ;;  %s184_s3 = inlined_call_operand.vmem [shape: f32[32,48], index: 3, kind: output, shape index: {}]  }
   0x1   :  { %v126_v0 = vld [vmem:[%s181_s1] sm:$0xff]   ;;  %v127_v1 = vld [vmem:[%s181_s1 + $0x8] sm:$0xff]   ;;  %v17_v5 = vld [vmem:[%s182_s0 + $0x10] sm:$0xff] }
   0x2   :  { %118 = vmatprep.subr.bf16.mxu0 %v126_v0  ;;  %v15_v2 = vld [vmem:[%s182_s0] sm:$0xff]  ;;  %v16_v3 = vld [vmem:[%s182_s0 + $0x8] sm:$0xff]  ;;  %v18_v6 = vld [vmem:[%s182_s0 + $0x18] sm:$0xff] }
   0x3   :  { %119 = vmatpush3.bf16.msra.mxu0 %v126_v0  ;;  %v19_v4 = vpack.c.bf16 %v16_v3, %v15_v2  ;;  %v20_v7 = vpack.c.bf16 %v18_v6, %v17_v5  ;;  %v109_v8 = vld [vmem:[%s183_s2] ss:$0 sm:$0xff] }
   0x4   :  { %120 = vmatprep.subr.bf16.mxu0 %v127_v1 }
   0x5   :  { %122 = vmatprep.mubr.msk.bf16.mxu0 %vm44_vm0, %v19_v4 }
   0x7   :  { %121 = vmatpush3.bf16.msra.mxu0 %v127_v1 }
   0xa   :  { %123 = vmatmul.mubr.msk.bf16.vlgmr.msra.gmra.mrb[0].mxu0 %vm44_vm0, %v20_v7 }
  0xdd   :  { %v124_v9 = vpop.f32.mrb[0].mxu0 }
  0xde   :  { %v94_v10 = vadd.f32 %v124_v9, %v109_v8  ;;  %v85_v11 = vpop.f32.mrb[1].mxu0 }
  0xdf   :  { %v86_v12 = vadd.f32 %v109_v8, %v85_v11  ;;  %v125_v13 = vpop.f32.mrb[2].mxu0 }
  0xe0   :  { %103 = vst.msk [vmem:[%s184_s3 + $0x10] sm:$0xff] %vm100_vm1, %v94_v10  ;;  %v97_v14 = vadd.f32 %v125_v13, %v109_v8  ;;  %v88_v15 = vpop.f32.mrb[3].mxu0 }
  0xe1   :  { %101 = vst.msk [vmem:[%s184_s3] sm:$0xff] %vm100_vm1, %v86_v12  ;;  %v89_v16 = vadd.f32 %v109_v8, %v88_v15 }
  0xe2   :  { %104 = vst.msk [vmem:[%s184_s3 + $0x18] sm:$0xff] %vm100_vm1, %v97_v14 }
  0xe3   :  { %102 = vst.msk [vmem:[%s184_s3 + $0x8] sm:$0xff] %vm100_vm1, %v89_v16 }

// kernel: pxt_forward.14
= control target key start
LH: loop header
LB: loop body
LE: loop exit
PB: predicated region body
PF: predicated region fallthrough
CT: control target
= control target key end

     0   :  { %vm33_vm0 = vcmask 261120   ;;  %vm336_vm5 = vcmask 523264   ;;  %s640_s0 = inlined_call_operand.vmem [shape: f32[32,32], index: 0, kind: input, shape index: {}, may-alias: {0,7}]   ;;  %s641_s3 = inlined_call_operand.vmem [shape: bf16[32,64], index: 3, kind: input, shape index: {}]   ;;  %s642_s1 = inlined_call_operand.vmem [shape: f32[1,32], index: 1, kind: input, shape index: {}]   ;;  %s643_s2 = inlined_call_operand.vmem [shape: f32[1,32], index: 2, kind: input, shape index: {}]   ;;  %s644_s5 = inlined_call_operand.vmem [shape: bf16[64,32], index: 5, kind: input, shape index: {}]   ;;  %s645_s4 = inlined_call_operand.vmem [shape: f32[1,64], index: 4, kind: input, shape index: {}]   ;;  %s646_s6 = inlined_call_operand.vmem [shape: f32[1,32], index: 6, kind: input, shape index: {}]   ;;  %s647_s7 = inlined_call_operand.vmem [shape: f32[32,32], index: 7, kind: output, shape index: {}, may-alias: {0,7}]  }
   0x1   :  { %v523_v0 = vld [vmem:[%s640_s0] sm:$0xff]  ;;  %v528_v1 = vld [vmem:[%s640_s0 + $0x10] sm:$0xff]  ;;  %v533_v2 = vld [vmem:[%s640_s0 + $0x8] sm:$0xff] }
   0x2   :  { %v34_v3 = vsel %vm33_vm0, %v523_v0, 0.0  ;;  %v40_v4 = vsel %vm33_vm0, %v528_v1, 0.0  ;;  %v542_v5 = vld [vmem:[%s640_s0 + $0x18] sm:$0xff]  ;;  %v37_v6 = vsel %vm33_vm0, %v533_v2, 0.0  ;;  %v449_v28 = vld [vmem:[%s641_s3] sm:$0xff]   ;;  %v450_v29 = vld [vmem:[%s641_s3 + $0x8] sm:$0xff]  }
   0x3   :  { %35 = vadd.xlane.f32.xlu0 %v34_v3  ;;  %41 = vadd.xlane.f32.xlu1 %v40_v4  ;;  %v43_v7 = vsel %vm33_vm0, %v542_v5, 0.0  ;;  %v404_v44 = vld [vmem:[%s642_s1] ss:$0 sm:$0xff]  ;;  %v452_v63 = vld [vmem:[%s644_s5 + $0x8] sm:$0xff]   ;;  %v453_v3 = vld [vmem:[%s644_s5 + $0x10] sm:$0xff]  }
   0x4   :  { %428 = vmatprep.subr.bf16.mxu0 %v449_v28  ;;  %v405_v50 = vld [vmem:[%s643_s2] ss:$0 sm:$0xff]  ;;  %v454_v4 = vld [vmem:[%s644_s5 + $0x18] sm:$0xff]  }
   0x5   :  { %429 = vmatpush3.bf16.msra.mxu0 %v449_v28  ;;  %v451_v62 = vld [vmem:[%s644_s5] sm:$0xff]  }
   0x6   :  { %430 = vmatprep.subr.bf16.mxu0 %v450_v29  ;;  %436 = vmatprep.subr.bf16.mxu1 %v451_v62 }
   0x7   :  { %38 = vadd.xlane.f32.xlu0 %v37_v6  ;;  %44 = vadd.xlane.f32.xlu1 %v43_v7  ;;  %v406_v6 = vld [vmem:[%s645_s4] ss:$0 sm:$0xff] }
   0x8   :  { %437 = vmatpush3.bf16.msra.mxu1 %v451_v62 }
   0x9   :  { %431 = vmatpush3.bf16.msra.mxu0 %v450_v29  ;;  %438 = vmatprep.subr.bf16.mxu1 %v452_v63 }
   0xc   :  { %439 = vmatpush3.bf16.msra.mxu1 %v452_v63 }
   0xd   :  { %440 = vmatprep.subr.bf16.mxu1 %v453_v3 }
  0x10   :  { %441 = vmatpush3.bf16.msra.mxu1 %v453_v3 }
  0x11   :  { %442 = vmatprep.subr.bf16.mxu1 %v454_v4 }
  0x14   :  { %443 = vmatpush3.bf16.msra.mxu1 %v454_v4 }
  0x90   :  { %v36_v8 = vpop.xlane.xlu0 %35  ;;  %v42_v9 = vpop.xlane.xlu1 %41 }
  0x91   :  { %v47_v10 = vmul.f32 0.03125, %v36_v8  ;;  %v49_v11 = vmul.f32 0.03125, %v42_v9 }
  0x93   :  { %v51_v12 = vsub.f32 %v523_v0, %v47_v10  ;;  %v53_v13 = vsub.f32 %v528_v1, %v49_v11 }
  0x94   :  { %v39_v14 = vpop.xlane.xlu0 %38  ;;  %v45_v15 = vpop.xlane.xlu1 %44 }
  0x95   :  { %v48_v16 = vmul.f32 0.03125, %v39_v14  ;;  %v50_v17 = vmul.f32 0.03125, %v45_v15  ;;  %v55_v18 = vmul.f32 %v51_v12, %v51_v12  ;;  %v57_v19 = vmul.f32 %v53_v13, %v53_v13 }
  0x97   :  { %v52_v20 = vsub.f32 %v533_v2, %v48_v16  ;;  %v54_v21 = vsub.f32 %v542_v5, %v50_v17  ;;  %v59_v22 = vsel %vm33_vm0, %v55_v18, 0.0  ;;  %v65_v23 = vsel %vm33_vm0, %v57_v19, 0.0 }
  0x98   :  { %60 = vadd.xlane.f32.xlu0 %v59_v22 }
  0x99   :  { %v56_v24 = vmul.f32 %v52_v20, %v52_v20  ;;  %v58_v25 = vmul.f32 %v54_v21, %v54_v21 }
  0x9b   :  { %v62_v26 = vsel %vm33_vm0, %v56_v24, 0.0  ;;  %v68_v27 = vsel %vm33_vm0, %v58_v25, 0.0 }
  0x9c   :  { %66 = vadd.xlane.f32.xlu0 %v65_v23  ;;  %63 = vadd.xlane.f32.xlu1 %v62_v26 }
  0xa0   :  { %69 = vadd.xlane.f32.xlu1 %v68_v27 }
 0x125   :  { %v61_v30 = vpop.xlane.xlu0 %60 }
 0x126   :  { %v71_v31 = vmul.f32 0.03125, %v61_v30 }
 0x128   :  { %v75_v32 = vadd.f32 1e-05, %v71_v31 }
 0x129   :  { %v64_v33 = vpop.xlane.xlu1 %63  ;;  %v67_v34 = vpop.xlane.xlu0 %66 }
 0x12a   :  { %455 = vrsqrt.f32 %v75_v32  ;;  %v72_v35 = vmul.f32 0.03125, %v64_v33  ;;  %v73_v36 = vmul.f32 0.03125, %v67_v34 }
 0x12c   :  { %v76_v37 = vadd.f32 1e-05, %v72_v35  ;;  %v77_v38 = vadd.f32 1e-05, %v73_v36 }
 0x12d   :  { %v70_v39 = vpop.xlane.xlu1 %69 }
 0x12e   :  { %457 = vrsqrt.f32 %v76_v37  ;;  %v74_v40 = vmul.f32 0.03125, %v70_v39 }
 0x12f   :  { %459 = vrsqrt.f32 %v77_v38 }
 0x130   :  { %v78_v41 = vadd.f32 1e-05, %v74_v40 }
 0x132   :  { %461 = vrsqrt.f32 %v78_v41 }
 0x134   :  { %v456_v42 = vpop.eup %455 }
 0x135   :  { %v83_v43 = vmul.f32 %v456_v42, %v51_v12 }
 0x137   :  { %v93_v48 = vmul.f32 %v404_v44, %v83_v43 }
 0x138   :  { %v458_v45 = vpop.eup %457 }
 0x139   :  { %v460_v46 = vpop.eup %459  ;;  %v84_v47 = vmul.f32 %v458_v45, %v52_v20  ;;  %v103_v54 = vadd.f32 %v405_v50, %v93_v48 }
 0x13a   :  { %v85_v49 = vmul.f32 %v460_v46, %v53_v13 }
 0x13b   :  { %v94_v51 = vmul.f32 %v404_v44, %v84_v47 }
 0x13c   :  { %v462_v52 = vpop.eup %461  ;;  %v95_v56 = vmul.f32 %v404_v44, %v85_v49 }
 0x13d   :  { %v86_v53 = vmul.f32 %v462_v52, %v54_v21  ;;  %v104_v55 = vadd.f32 %v405_v50, %v94_v51 }
 0x13e   :  { %v105_v59 = vadd.f32 %v405_v50, %v95_v56 }
 0x13f   :  { %v107_v57 = vpack.c.bf16 %v104_v55, %v103_v54  ;;  %v96_v58 = vmul.f32 %v404_v44, %v86_v53 }
 0x141   :  { %432 = vmatprep.mubr.msk.bf16.mxu0 %vm33_vm0, %v107_v57  ;;  %v106_v60 = vadd.f32 %v405_v50, %v96_v58 }
 0x143   :  { %v108_v61 = vpack.c.bf16 %v106_v60, %v105_v59 }
 0x145   :  { %433 = vmatmul.mubr.msk.bf16.vlgmr.msra.gmra.mrb[0].mxu0 %vm33_vm0, %v108_v61 }
 0x218   :  { %v434_v7 = vpop.f32.mrb[0].mxu0 }
 0x219   :  { %v585_v8 = vadd.f32 %v434_v7, %v406_v6  ;;  %v172_v9 = vpop.f32.mrb[1].mxu0 }
 0x21a   :  { %v587_v10 = vadd.f32 %v406_v6, %v172_v9  ;;  %v435_v11 = vpop.f32.mrb[2].mxu0 }
 0x21b   :  { %v590_v12 = vmul.f32 0.70710677, %v585_v8  ;;  %v592_v13 = vadd.f32 %v435_v11, %v406_v6  ;;  %v175_v14 = vpop.f32.mrb[3].mxu0 }
 0x21c   :  { %v595_v15 = vmul.f32 0.70710677, %v587_v10  ;;  %v601_v18 = vadd.f32 %v406_v6, %v175_v14 }
 0x21d   :  { %v205_v16 = vand.u32 2147483647, %v590_v12  ;;  %v599_v17 = vmul.f32 0.70710677, %v592_v13  ;;  %vm197_vm1 = vcmp.ge.f32.partialorder %v590_v12, 0.0 }
 0x21e   :  { %v203_v19 = vand.u32 2147483647, %v595_v15  ;;  %v606_v24 = vmul.f32 0.70710677, %v601_v18  ;;  %vm195_vm2 = vcmp.ge.f32.partialorder %v595_v15, 0.0 }
 0x21f   :  { %v209_v20 = vmul.f32 0.3275911, %v205_v16  ;;  %v206_v22 = vand.u32 2147483647, %v599_v17  ;;  %v261_v31 = vsub.f32 0.0, %v205_v16  ;;  %vm198_vm3 = vcmp.ge.f32.partialorder %v599_v17, 0.0 }
 0x220   :  { %v207_v21 = vmul.f32 0.3275911, %v203_v19  ;;  %v204_v27 = vand.u32 2147483647, %v606_v24  ;;  %v259_v32 = vsub.f32 0.0, %v203_v19  ;;  %vm196_vm4 = vcmp.ge.f32.partialorder %v606_v24, 0.0 }
 0x221   :  { %v213_v23 = vadd.f32 1.0, %v209_v20  ;;  %v210_v26 = vmul.f32 0.3275911, %v206_v22  ;;  %v265_v34 = vmul.f32 %v261_v31, %v205_v16  ;;  %v262_v35 = vsub.f32 0.0, %v206_v22 }
 0x222   :  { %v211_v25 = vadd.f32 1.0, %v207_v21  ;;  %v208_v29 = vmul.f32 0.3275911, %v204_v27  ;;  %v263_v38 = vmul.f32 %v259_v32, %v203_v19  ;;  %v260_v39 = vsub.f32 0.0, %v204_v27 }
 0x223   :  { %463 = vrcp.f32 %v213_v23  ;;  %v214_v28 = vadd.f32 1.0, %v210_v26  ;;  %v271_v43 = vmul.f32 1.442695, %v265_v34  ;;  %v266_v44 = vmul.f32 %v262_v35, %v206_v22 }
 0x224   :  { %465 = vrcp.f32 %v211_v25  ;;  %v212_v30 = vadd.f32 1.0, %v208_v29  ;;  %v267_v47 = vmul.f32 1.442695, %v263_v38  ;;  %v264_v50 = vmul.f32 %v260_v39, %v204_v27 }
 0x225   :  { %467 = vrcp.f32 %v214_v28  ;;  %v273_v55 = vmul.f32 1.442695, %v266_v44  ;;  %v479_v38 = vmov -1.0   ;;  %v188_v24 = vmul.f32 0.5, %v601_v18 }
 0x226   :  { %469 = vrcp.f32 %v212_v30  ;;  %v269_v60 = vmul.f32 1.442695, %v264_v50  ;;  %v201_v39 = vsel %vm197_vm1, 1.0, %v479_v38  ;;  %v199_v12 = vsel %vm195_vm2, 1.0, %v479_v38 }
 0x227   :  { %471 = vpow2.f32 %v271_v43  ;;  %v189_v50 = vmul.f32 0.5, %v585_v8  ;;  %v411_v8 = vld [vmem:[%s646_s6] ss:$0 sm:$0xff] }
 0x228   :  { %473 = vpow2.f32 %v267_v47  ;;  %v202_v47 = vsel %vm198_vm3, 1.0, %v479_v38 }
 0x229   :  { %475 = vpow2.f32 %v273_v55 }
 0x22a   :  { %477 = vpow2.f32 %v269_v60 }
 0x22d   :  { %v464_v33 = vpop.eup %463 }
 0x22e   :  { %v466_v36 = vpop.eup %465  ;;  %v225_v37 = vmul.f32 1.0614054, %v464_v33 }
 0x22f   :  { %v223_v40 = vmul.f32 1.0614054, %v466_v36  ;;  %v468_v42 = vpop.eup %467 }
 0x230   :  { %v229_v41 = vadd.f32 -1.4531521, %v225_v37  ;;  %v226_v48 = vmul.f32 1.0614054, %v468_v42  ;;  %v470_v49 = vpop.eup %469 }
 0x231   :  { %v227_v45 = vadd.f32 -1.4531521, %v223_v40  ;;  %v224_v54 = vmul.f32 1.0614054, %v470_v49  ;;  %v472_v25 = vpop.eup %471 }
 0x232   :  { %v233_v46 = vmul.f32 %v464_v33, %v229_v41  ;;  %v230_v53 = vadd.f32 -1.4531521, %v226_v48  ;;  %v474_v27 = vpop.eup %473 }
 0x233   :  { %v231_v51 = vmul.f32 %v466_v36, %v227_v45  ;;  %v228_v59 = vadd.f32 -1.4531521, %v224_v54  ;;  %v476_v37 = vpop.eup %475 }
 0x234   :  { %v237_v52 = vadd.f32 1.4214138, %v233_v46  ;;  %v234_v58 = vmul.f32 %v468_v42, %v230_v53  ;;  %v478_v43 = vpop.eup %477 }
 0x235   :  { %v235_v56 = vadd.f32 1.4214138, %v231_v51  ;;  %v232_v3 = vmul.f32 %v470_v49, %v228_v59  ;;  %v200_v51 = vsel %vm196_vm4, 1.0, %v479_v38 }
 0x236   :  { %v241_v57 = vmul.f32 %v464_v33, %v237_v52  ;;  %v238_v63 = vadd.f32 1.4214138, %v234_v58  ;;  %v190_v52 = vmul.f32 0.5, %v592_v13 }
 0x237   :  { %v239_v61 = vmul.f32 %v466_v36, %v235_v56  ;;  %v236_v9 = vadd.f32 1.4214138, %v232_v3 }
 0x238   :  { %v245_v62 = vadd.f32 -0.28449672, %v241_v57  ;;  %v242_v7 = vmul.f32 %v468_v42, %v238_v63 }
 0x239   :  { %v243_v4 = vadd.f32 -0.28449672, %v239_v61  ;;  %v240_v19 = vmul.f32 %v470_v49, %v236_v9 }
 0x23a   :  { %v249_v6 = vmul.f32 %v464_v33, %v245_v62  ;;  %v246_v16 = vadd.f32 -0.28449672, %v242_v7 }
 0x23b   :  { %v247_v11 = vmul.f32 %v466_v36, %v243_v4  ;;  %v244_v23 = vadd.f32 -0.28449672, %v240_v19 }
 0x23c   :  { %v253_v14 = vadd.f32 0.2548296, %v249_v6  ;;  %v250_v22 = vmul.f32 %v468_v42, %v246_v16 }
 0x23d   :  { %v251_v20 = vadd.f32 0.2548296, %v247_v11  ;;  %v248_v30 = vmul.f32 %v470_v49, %v244_v23 }
 0x23e   :  { %v257_v21 = vmul.f32 %v464_v33, %v253_v14  ;;  %v254_v29 = vadd.f32 0.2548296, %v250_v22 }
 0x23f   :  { %v255_v26 = vmul.f32 %v466_v36, %v251_v20  ;;  %v252_v35 = vadd.f32 0.2548296, %v248_v30 }
 0x240   :  { %v277_v28 = vmul.f32 %v472_v25, %v257_v21  ;;  %v258_v34 = vmul.f32 %v468_v42, %v254_v29 }
 0x241   :  { %v275_v31 = vmul.f32 %v474_v27, %v255_v26  ;;  %v256_v41 = vmul.f32 %v470_v49, %v252_v35  ;;  %v187_v49 = vmul.f32 0.5, %v587_v10 }
 0x242   :  { %v281_v32 = vsub.f32 1.0, %v277_v28  ;;  %v278_v36 = vmul.f32 %v476_v37, %v258_v34 }
 0x243   :  { %v279_v33 = vsub.f32 1.0, %v275_v31  ;;  %v276_v45 = vmul.f32 %v478_v43, %v256_v41 }
 0x244   :  { %v285_v40 = vmul.f32 %v281_v32, %v201_v39  ;;  %v282_v44 = vsub.f32 1.0, %v278_v36 }
 0x245   :  { %v283_v46 = vmul.f32 %v279_v33, %v199_v12  ;;  %v280_v48 = vsub.f32 1.0, %v276_v45 }
 0x246   :  { %v289_v15 = vadd.f32 1.0, %v285_v40  ;;  %v286_v42 = vmul.f32 %v282_v44, %v202_v47 }
 0x247   :  { %v284_v17 = vmul.f32 %v280_v48, %v200_v51  ;;  %v287_v54 = vadd.f32 1.0, %v283_v46 }
 0x248   :  { %v290_v53 = vadd.f32 1.0, %v286_v42  ;;  %v293_v55 = vmul.f32 %v289_v15, %v189_v50 }
 0x249   :  { %v288_v57 = vadd.f32 1.0, %v284_v17  ;;  %v291_v59 = vmul.f32 %v287_v54, %v187_v49 }
 0x24a   :  { %v294_v56 = vmul.f32 %v290_v53, %v190_v52 }
 0x24b   :  { %v292_v60 = vmul.f32 %v288_v57, %v188_v24 }
 0x24c   :  { %v296_v58 = vpack.c.bf16 %v294_v56, %v293_v55 }
 0x24d   :  { %v295_v61 = vpack.c.bf16 %v292_v60, %v291_v59 }
 0x24f   :  { %444 = vmatprep.mubr.msk.bf16.mxu1 %vm336_vm5, %v295_v61 }
 0x250   :  { %445 = vmatmul.mubr.msk.bf16.vlgmr.msra.gmra.mrb[0].mxu1 %vm336_vm5, %v296_v58 }
 0x323   :  { %v446_v13 = vpop.f32.mrb[0].mxu1 }
 0x324   :  { %v386_v62 = vadd.f32 %v446_v13, %v411_v8  ;;  %v377_v63 = vpop.f32.mrb[1].mxu1 }
 0x325   :  { %v378_v10 = vadd.f32 %v411_v8, %v377_v63  ;;  %v447_v3 = vpop.f32.mrb[2].mxu1 }
 0x326   :  { %v394_v4 = vadd.f32 %v386_v62, %v528_v1  ;;  %v389_v18 = vadd.f32 %v447_v3, %v411_v8  ;;  %v380_v6 = vpop.f32.mrb[3].mxu1 }
 0x327   :  { %v392_v7 = vadd.f32 %v378_v10, %v523_v0  ;;  %v381_v9 = vadd.f32 %v411_v8, %v380_v6 }
 0x328   :  { %398 = vst.msk [vmem:[%s647_s7 + $0x10] sm:$0xff] %vm33_vm0, %v394_v4  ;;  %v395_v11 = vadd.f32 %v389_v18, %v542_v5 }
 0x329   :  { %396 = vst.msk [vmem:[%s647_s7] sm:$0xff] %vm33_vm0, %v392_v7  ;;  %v393_v14 = vadd.f32 %v381_v9, %v533_v2 }
 0x32a   :  { %399 = vst.msk [vmem:[%s647_s7 + $0x18] sm:$0xff] %vm33_vm0, %v395_v11 }
 0x32b   :  { %397 = vst.msk [vmem:[%s647_s7 + $0x8] sm:$0xff] %vm33_vm0, %v393_v14 }

</bundles_post_ra>
